<compile_context>
chip_gen: v6e
topology: v6e:2x2x1
jax: 0.10.0
libtpu: 0.0.40
codegen_flags: <defaults>
</compile_context>

<pallas_src>
import jax
import jax.numpy as jnp
from jax.experimental import pallas as pl
from jax.experimental.pallas import tpu as pltpu


# Batch rows packed per lane row.  P = 32 makes every lane dimension a multiple of the
# 128-lane vreg width for this module's shapes (n_input=16, n_hid=32, n_out=4):
#   x packs to   (B/P, P*n_input) = (B/32, 512)
#   hidden is    (...,  P*n_hid)  = (...,  1024)
#   out packs to (B/P, P*n_out)   = (B/32, 128)   -> unmasked, lane-dense stores + DMA
P = 32


def _mlp_kernel(x_ref, w1_ref, b1_ref, w2_ref, b2_ref, o_ref):
    # x_ref : (rows, P*n_input)     packed activations (lane-dense)
    # w1_ref: (P*n_input, P*n_hid)  block-diagonal first-layer weights (VMEM resident)
    # b1_ref: (1, P*n_hid)          f32
    # w2_ref: (P*n_hid, P*n_out)    block-diagonal second-layer weights (VMEM resident)
    # b2_ref: (1, P*n_out)          f32
    # o_ref : (rows, P*n_out)       packed outputs (lane-dense)
    x = x_ref[...].astype(w1_ref.dtype)            # no-op in f32; in-kernel cast for bf16
    h = jnp.dot(x, w1_ref[...], preferred_element_type=jnp.float32)
    h = jnp.maximum(h + b1_ref[...], 0.0)          # bias + ReLU in f32 (safe on v5e)
    y = jnp.dot(h.astype(w2_ref.dtype), w2_ref[...],
                preferred_element_type=jnp.float32)
    o_ref[...] = jax.nn.sigmoid(y + b2_ref[...])   # sigmoid in f32 (EUP)


def prepare_params(w1, b1, w2, b2, *, use_bf16=False):
    """One-time (hoisted) weight expansion for the packed kernel.

    Call this at init (NOT per forward call) so the ~2.5 MiB block-diagonal kron expansion
    never sits on the hot path as a separate HBM write + re-read.

    use_bf16 stores the matmul weights in bf16 (halves resident weights / weight DMA).
    Safe on v5e/v6e/v7x alike: the MXU is bf16-native on all three, and all VPU/EUP work
    (bias add, ReLU, sigmoid) stays in f32 inside the kernel.
    """
    w1 = jnp.asarray(w1, jnp.float32)
    w2 = jnp.asarray(w2, jnp.float32)
    wdt = jnp.bfloat16 if use_bf16 else jnp.float32
    eye = jnp.eye(P, dtype=jnp.float32)
    return {
        "w1": jnp.kron(eye, w1).astype(wdt),                        # (P*n_in,  P*n_hid)
        "b1": jnp.tile(jnp.asarray(b1, jnp.float32), P)[None, :],   # (1, P*n_hid)
        "w2": jnp.kron(eye, w2).astype(wdt),                        # (P*n_hid, P*n_out)
        "b2": jnp.tile(jnp.asarray(b2, jnp.float32), P)[None, :],   # (1, P*n_out)
    }


def _choose_rows(total_rows, target_rows):
    """Largest multiple-of-8 divisor of total_rows that is <= target_rows, preferring an
    even grid-step count (keeps both v7x TensorCores busy) when that doesn't shrink the
    per-step tile by more than 2x."""
    target = max(8, min(target_rows, total_rows))
    best, best_even = 8, None
    for d in range(8, target + 1, 8):
        if total_rows % d == 0:
            best = d
            if (total_rows // d) % 2 == 0:
                best_even = d
    if best_even is not None and 2 * best_even >= best:
        return best_even
    return best


def nonlinear_regression(x, params, *, tm=32768):
    """Forward pass of NonLinearRegression (Linear -> ReLU -> Linear -> Sigmoid).

    x      : (B, n_input) f32 (or bf16: passing bf16 x halves the dominant x HBM stream;
             otherwise x is cast inside the kernel, with no extra wrapper round trip).
    params : dict from prepare_params() (expanded weights, hoisted out of the hot path).
    tm     : target batch rows per grid step.  Default 32768 (= 1024 packed rows) puts
             ~2 MiB of x per step against the ~0.35 us fixed per-step overhead, and the
             double-buffered working set (~10 MiB f32) stays well under the 32 MiB scoped
             VMEM default on v5e/v6e/v7x.
    """
    B, n_input = x.shape
    w1_big, b1_big = params["w1"], params["b1"]
    w2_big, b2_big = params["w2"], params["b2"]
    n_hid = w1_big.shape[1] // P
    n_out = w2_big.shape[1] // P
    assert w1_big.shape[0] == P * n_input

    # Pad the batch only to a multiple of 8*P (one packed sublane group), never to tm.
    B_pad = pl.cdiv(B, 8 * P) * (8 * P)
    if B_pad != B:
        x = jnp.pad(x, ((0, B_pad - B), (0, 0)))

    # Lane-dense packing: P batch rows per lane row (free row-major reshape).
    x_p = x.reshape(B_pad // P, P * n_input)

    total_rows = B_pad // P
    rows = _choose_rows(total_rows, tm // P)
    grid = (total_rows // rows,)

    # Advisory cost hint so XLA schedules this tiny, mem-bound call sensibly.
    flops = (2 * total_rows * (P * n_input) * (P * n_hid)
             + 2 * total_rows * (P * n_hid) * (P * n_out))
    bytes_accessed = (x_p.size * x_p.dtype.itemsize
                      + total_rows * P * n_out * 4
                      + w1_big.size * w1_big.dtype.itemsize
                      + w2_big.size * w2_big.dtype.itemsize
                      + (b1_big.size + b2_big.size) * 4)

    out_p = pl.pallas_call(
        _mlp_kernel,
        out_shape=jax.ShapeDtypeStruct((total_rows, P * n_out), jnp.float32),
        grid=grid,
        in_specs=[
            # batch-tiled packed activations
            pl.BlockSpec((rows, P * n_input), lambda i: (i, 0)),
            # weights / biases: full arrays, constant index_map -> DMA'd once, VMEM resident.
            # Even double-buffered they are ~5 MiB f32 / ~2.5 MiB bf16, negligible against
            # v7x's smaller VMEM, so no need to force single buffering.
            pl.BlockSpec((P * n_input, P * n_hid), lambda i: (0, 0)),
            pl.BlockSpec((1, P * n_hid), lambda i: (0, 0)),
            pl.BlockSpec((P * n_hid, P * n_out), lambda i: (0, 0)),
            pl.BlockSpec((1, P * n_out), lambda i: (0, 0)),
        ],
        out_specs=pl.BlockSpec((rows, P * n_out), lambda i: (i, 0)),
        compiler_params=pltpu.CompilerParams(
            dimension_semantics=("parallel",)),
        cost_estimate=pl.CostEstimate(
            flops=flops,
            transcendentals=total_rows * P * n_out,
            bytes_accessed=bytes_accessed),
    )(x_p, w1_big, b1_big, w2_big, b2_big)

    # Free row-major unpack, then drop the padded rows.
    return out_p.reshape(B_pad, n_out)[:B]


def _init_linear(key, fan_in, fan_out):
    # Deterministic init mimicking torch.nn.Linear (uniform +/- 1/sqrt(fan_in)),
    # stored as (in, out) so the kernel does x @ W + b.
    kw, kb = jax.random.split(key)
    bound = 1.0 / (fan_in ** 0.5)
    w = jax.random.uniform(kw, (fan_in, fan_out), jnp.float32, -bound, bound)
    b = jax.random.uniform(kb, (fan_out,), jnp.float32, -bound, bound)
    return w, b


if __name__ == "__main__":
    # Shapes consistent with the module: n_input=16, n_hid=32, n_out=4.
    # B=1000 exercises the pad-to-256-multiple path (padded to 1024 -> 2-step grid here).
    B, n_input, n_hid, n_out = 1000, 16, 32, 4

    key = jax.random.PRNGKey(0)
    kx, k1, k2 = jax.random.split(key, 3)

    x = jax.random.normal(kx, (B, n_input), jnp.float32)
    w1, b1 = _init_linear(k1, n_input, n_hid)
    w2, b2 = _init_linear(k2, n_hid, n_out)

    # One-time weight expansion (hoisted out of the per-call path).
    params_f32 = prepare_params(w1, b1, w2, b2)
    params_bf16 = prepare_params(w1, b1, w2, b2, use_bf16=True)

    fwd = jax.jit(nonlinear_regression)

    # Reference in plain JAX (same math as the PyTorch forward).
    ref = jax.nn.sigmoid(jnp.maximum(x @ w1 + b1, 0.0) @ w2 + b2)

    # f32 path
    out = jax.block_until_ready(fwd(x, params_f32))
    assert out.shape == (B, n_out)
    assert jnp.allclose(out, ref, atol=5e-3), "f32 kernel mismatch vs reference"

    # bf16 matmul-operand path (f32 accumulation / bias / ReLU / sigmoid; valid on v5e too).
    # TODO(synk): confirm ~1e-2 absolute error on sigmoid outputs is acceptable before
    # defaulting the regression head to bf16 weights.
    out_bf16 = jax.block_until_ready(fwd(x, params_bf16))
    assert jnp.allclose(out_bf16, ref, atol=3e-2), "bf16 kernel mismatch vs reference"

    print("KERNEL_OK")
</pallas_src>

<mosaic_0001>
module attributes {stable_mosaic.version = 11 : i64} {
  func.func @_mlp_kernel(%arg0: i32, %arg1: memref<16x512xf32, #tpu.memory_space<vmem>>, %arg2: memref<512x1024xf32, #tpu.memory_space<vmem>>, %arg3: memref<1x1024xf32, #tpu.memory_space<vmem>>, %arg4: memref<1024x128xf32, #tpu.memory_space<vmem>>, %arg5: memref<1x128xf32, #tpu.memory_space<vmem>>, %arg6: memref<16x128xf32, #tpu.memory_space<vmem>>) attributes {dimension_semantics = [#tpu.dimension_semantics<parallel>], iteration_bounds = array<i64: 2>, scalar_prefetch = 0 : i64, scratch_operands = 0 : i64, tpu.core_type = #tpu.core_type<tc>, window_params = [{transform_indices = @transform_0, window_bounds = array<i64: 16, 512>}, {pipeline_mode = #tpu.pipeline_mode<synchronous>, transform_indices = @transform_1, window_bounds = array<i64: 512, 1024>}, {pipeline_mode = #tpu.pipeline_mode<synchronous>, transform_indices = @transform_2, window_bounds = array<i64: 1, 1024>}, {pipeline_mode = #tpu.pipeline_mode<synchronous>, transform_indices = @transform_3, window_bounds = array<i64: 1024, 128>}, {pipeline_mode = #tpu.pipeline_mode<synchronous>, transform_indices = @transform_4, window_bounds = array<i64: 1, 128>}, {transform_indices = @transform_5, window_bounds = array<i64: 16, 128>}]} {
    %c0 = arith.constant 0 : index
    %c0_0 = arith.constant 0 : index
    %0 = vector.load %arg1[%c0, %c0_0] : memref<16x512xf32, #tpu.memory_space<vmem>>, vector<16x512xf32>
    %c0_1 = arith.constant 0 : index
    %c0_2 = arith.constant 0 : index
    %1 = vector.load %arg2[%c0_1, %c0_2] : memref<512x1024xf32, #tpu.memory_space<vmem>>, vector<512x1024xf32>
    %cst = arith.constant dense<0.000000e+00> : vector<16x1024xf32>
    %2 = tpu.matmul %0, %1, %cst {dimension_numbers = #tpu.dot_dimension_numbers<[1], [0], [0], [1], [0, 0, 1, 1], [], []>} : vector<16x512xf32>, vector<512x1024xf32>, vector<16x1024xf32> -> vector<16x1024xf32>
    %c0_3 = arith.constant 0 : index
    %c0_4 = arith.constant 0 : index
    %3 = vector.load %arg3[%c0_3, %c0_4] : memref<1x1024xf32, #tpu.memory_space<vmem>>, vector<1x1024xf32>
    %4 = vector.broadcast %3 : vector<1x1024xf32> to vector<16x1024xf32>
    %5 = arith.addf %2, %4 : vector<16x1024xf32>
    %cst_5 = arith.constant 0.000000e+00 : f32
    %6 = vector.broadcast %cst_5 : f32 to vector<16x1024xf32>
    %7 = arith.maximumf %5, %6 : vector<16x1024xf32>
    %c0_6 = arith.constant 0 : index
    %c0_7 = arith.constant 0 : index
    %8 = vector.load %arg4[%c0_6, %c0_7] : memref<1024x128xf32, #tpu.memory_space<vmem>>, vector<1024x128xf32>
    %cst_8 = arith.constant dense<0.000000e+00> : vector<16x128xf32>
    %9 = tpu.matmul %7, %8, %cst_8 {dimension_numbers = #tpu.dot_dimension_numbers<[1], [0], [0], [1], [0, 0, 1, 1], [], []>} : vector<16x1024xf32>, vector<1024x128xf32>, vector<16x128xf32> -> vector<16x128xf32>
    %c0_9 = arith.constant 0 : index
    %c0_10 = arith.constant 0 : index
    %10 = vector.load %arg5[%c0_9, %c0_10] : memref<1x128xf32, #tpu.memory_space<vmem>>, vector<1x128xf32>
    %11 = vector.broadcast %10 : vector<1x128xf32> to vector<16x128xf32>
    %12 = arith.addf %9, %11 : vector<16x128xf32>
    %13 = arith.negf %12 : vector<16x128xf32>
    %14 = math.exp %13 : vector<16x128xf32>
    %cst_11 = arith.constant 1.000000e+00 : f32
    %15 = vector.broadcast %cst_11 : f32 to vector<16x128xf32>
    %16 = arith.addf %15, %14 : vector<16x128xf32>
    %17 = arith.divf %15, %16 : vector<16x128xf32>
    %c0_12 = arith.constant 0 : index
    %c0_13 = arith.constant 0 : index
    %18 = vector.load %arg6[%c0_12, %c0_13] : memref<16x128xf32, #tpu.memory_space<vmem>>, vector<16x128xf32>
    tpu.vector_store %arg6[%c0_12, %c0_13], %17 {strides = array<i32>} : memref<16x128xf32, #tpu.memory_space<vmem>>, vector<16x128xf32>,
    return
  }
  func.func @transform_0(%arg0: i32) -> (i32, i32) {
    %c0_i32 = arith.constant 0 : i32
    %c0_i32_0 = arith.constant 0 : i32
    return %arg0, %c0_i32 : i32, i32
  }
  func.func @transform_1(%arg0: i32) -> (i32, i32) {
    %c0_i32 = arith.constant 0 : i32
    %c0_i32_0 = arith.constant 0 : i32
    %c0_i32_1 = arith.constant 0 : i32
    return %c0_i32, %c0_i32_0 : i32, i32
  }
  func.func @transform_2(%arg0: i32) -> (i32, i32) {
    %c0_i32 = arith.constant 0 : i32
    %c0_i32_0 = arith.constant 0 : i32
    %c0_i32_1 = arith.constant 0 : i32
    return %c0_i32, %c0_i32_0 : i32, i32
  }
  func.func @transform_3(%arg0: i32) -> (i32, i32) {
    %c0_i32 = arith.constant 0 : i32
    %c0_i32_0 = arith.constant 0 : i32
    %c0_i32_1 = arith.constant 0 : i32
    return %c0_i32, %c0_i32_0 : i32, i32
  }
  func.func @transform_4(%arg0: i32) -> (i32, i32) {
    %c0_i32 = arith.constant 0 : i32
    %c0_i32_0 = arith.constant 0 : i32
    %c0_i32_1 = arith.constant 0 : i32
    return %c0_i32, %c0_i32_0 : i32, i32
  }
  func.func @transform_5(%arg0: i32) -> (i32, i32) {
    %c0_i32 = arith.constant 0 : i32
    %c0_i32_0 = arith.constant 0 : i32
    return %arg0, %c0_i32 : i32, i32
  }
}

</mosaic_0001>

<bundles_post_ra>
// kernel: nonlinear_regression.1
= control target key start
LH: loop header
LB: loop body
LE: loop exit
PB: predicated region body
PF: predicated region fallthrough
CT: control target
= control target key end

     0   :  { %10 = vsyncpa [#allocation3], 0  ;;  %s2235_s18 = smov 0   ;;  %s3933_s0 = inlined_call_operand.vmem [shape: f32[32,512], index: 0, kind: input, shape index: {}]   ;;  %s3934_s1 = inlined_call_operand.vmem [shape: f32[512,1024], index: 1, kind: input, shape index: {}]   ;;  %s3935_s2 = inlined_call_operand.vmem [shape: f32[1,1024], index: 2, kind: input, shape index: {}]   ;;  %s3936_s3 = inlined_call_operand.hbm [shape: f32[1024,128], index: 3, kind: input, shape index: {}]   ;;  %s3937_s4 = inlined_call_operand.vmem [shape: f32[1,128], index: 4, kind: input, shape index: {}]   ;;  %s3938_s5 = inlined_call_operand.vmem [shape: f32[32,128], index: 5, kind: output, shape index: {}]  }
   0x1 LB: > { %s1957_s19 = sadd.s32 4294967295, %s2200_s18   ;;  %p1959_p0 = scmp.ge.s32.totalorder %s2200_s18, 1  ;;  %s2200_s18 = sphi %s2235_s18, %s16_s18  }
   0x2   : > { %p157_p1 = scmp.lt.s32.totalorder %s2200_s18, 3  ;;  %s2202_s20 = smov [#allocation2]  }
   0x3   : > { %s175_s21 = sshll.u32 %s2202_s20, 4  ;;  %p2249_p3 = scmp.eq.s32.totalorder %s1957_s19, 0  ;;  %s176_s21 = int_to_ptr.vmem [resolvable:$true] %s175_s21 }
   0x4   : > { %p2243_p2 = pnand %p1959_p0, %p157_p1  ;;  %s2175_s24 = scalar_lea.vmem %s176_s21, 16384 }
   0x5   : > { %p2176_p7 = scmp.ne.s32.totalorder %s176_s21, %s2175_s24  ;;  %p2183_p10 = scmp.lt.s32.totalorder %s176_s21, %s176_s21 }
   0x6   : > { %p2131_p4 = pneg %p2243_p2  ;;  %p2184_p11 = scmp.lt.s32.totalorder %s2175_s24, %s2175_s24 }
   0x8   : > { %p2132_p5 = pnand %p2249_p3, %p2131_p4  ;;  %p2185_p12 = por %p2184_p11, %p2183_p10 }
   0xa   : > { %p2166_p6 = pneg %p2132_p5 }
   0xc   : > { %p2178_p8 = pnand %p2176_p7, %p2166_p6 }
   0xe   : > { %p2179_p9 = pneg %p2178_p8 }
  0x10   : > { %p2186_p13 = pnand %p2185_p12, %p2179_p9 }
  0x12   : > { %2189 = shalt.err (!%p2186_p13)
}
  0x13   : > { %s2203_s25 = smov 128   ;;  %s2204_s26 = smov 8  }
  0x14   : > { %2134 = dma.hbm_to_vmem [thread:$0]  (!%p2132_p5), %s3936_s3, 16384, %s176_s21, [#allocation3], %s2203_s25, %s2203_s25, %s2204_s26  }
  0x15   : > { %204 = sbr.rel (%p2243_p2) target bundleno = 736 (0x2e0), region = 40 }
  0x1a   : > { %2195 = dma.done.wait (%p2249_p3), [#allocation3], 16384  }
  0x1b   : > { %2197 = vsyncadd (%p2249_p3), [#allocation3], 4294950912  ;;  %v375_v0 = vld [vmem:[%s3934_s1 + $0x3c8] sm:$0xff]  ;;  %v374_v2 = vld [vmem:[%s3934_s1 + $0x3c0] sm:$0xff]  ;;  %s2550_s8 = sshll.u32 %s1957_s19, 1 }
  0x1c   : > { %v631_v1 = vld [vmem:[%s3934_s1 + $0xbc8] sm:$0xff]  ;;  %808 = vmatprep.subr.mxu0 %v375_v0  ;;  %v630_v3 = vld [vmem:[%s3934_s1 + $0xbc0] sm:$0xff]  ;;  %p234_p0 = scmp.lt.s32.totalorder %s2550_s8, 3 }
  0x1d   : > { %885 = vmatprep.subr.mxu1 %v631_v1  ;;  %v367_v4 = vld [vmem:[%s3934_s1 + $0x388] sm:$0xff]  ;;  %809 = vmatpush1.msra.mxu0 %v374_v2  ;;  %v366_v6 = vld [vmem:[%s3934_s1 + $0x380] sm:$0xff] }
  0x1e   : > { %v623_v5 = vld [vmem:[%s3934_s1 + $0xb88] sm:$0xff]  ;;  %886 = vmatpush1.msra.mxu1 %v630_v3  ;;  %v622_v7 = vld [vmem:[%s3934_s1 + $0xb80] sm:$0xff]  ;;  %810 = vmatprep.subr.mxu0 %v367_v4  ;;  %s3942_s8 = smov (!%p234_p0, %s2550_s8), 3 }
  0x1f   : > { %v359_v8 = vld [vmem:[%s3934_s1 + $0x348] sm:$0xff]  ;;  %887 = vmatprep.subr.mxu1 %v623_v5  ;;  %v358_v10 = vld [vmem:[%s3934_s1 + $0x340] sm:$0xff]  ;;  %811 = vmatpush1.msra.mxu0 %v366_v6  ;;  %s1974_s6 = sshll.u32 %s3942_s8, 5  ;;  %s1968_s13 = sshll.u32 %s3942_s8, 3 }
  0x20   : > { %v615_v9 = vld [vmem:[%s3934_s1 + $0xb48] sm:$0xff]  ;;  %v614_v11 = vld [vmem:[%s3934_s1 + $0xb40] sm:$0xff]  ;;  %888 = vmatpush1.msra.mxu1 %v622_v7  ;;  %812 = vmatprep.subr.mxu0 %v359_v8  ;;  %s2646_s23 = scalar_lea.vmem %s3933_s0, %s1974_s6  ;;  %s244_s19 = scalar_lea.vmem %s3938_s5, %s1968_s13 }
  0x21   : > { %v351_v12 = vld [vmem:[%s3934_s1 + $0x308] sm:$0xff]  ;;  %889 = vmatprep.subr.mxu1 %v615_v9  ;;  %v350_v14 = vld [vmem:[%s3934_s1 + $0x300] sm:$0xff]  ;;  %813 = vmatpush1.msra.mxu0 %v358_v10 }
  0x22   : > { %v607_v13 = vld [vmem:[%s3934_s1 + $0xb08] sm:$0xff]  ;;  %v606_v15 = vld [vmem:[%s3934_s1 + $0xb00] sm:$0xff]  ;;  %890 = vmatpush1.msra.mxu1 %v614_v11  ;;  %814 = vmatprep.subr.mxu0 %v351_v12 }
  0x23   : > { %v343_v16 = vld [vmem:[%s3934_s1 + $0x2c8] sm:$0xff]  ;;  %891 = vmatprep.subr.mxu1 %v607_v13  ;;  %v342_v18 = vld [vmem:[%s3934_s1 + $0x2c0] sm:$0xff]  ;;  %815 = vmatpush1.msra.mxu0 %v350_v14 }
  0x24   : > { %v599_v17 = vld [vmem:[%s3934_s1 + $0xac8] sm:$0xff]  ;;  %v598_v19 = vld [vmem:[%s3934_s1 + $0xac0] sm:$0xff]  ;;  %892 = vmatpush1.msra.mxu1 %v606_v15  ;;  %816 = vmatprep.subr.mxu0 %v343_v16 }
  0x25   : > { %v335_v20 = vld [vmem:[%s3934_s1 + $0x288] sm:$0xff]  ;;  %893 = vmatprep.subr.mxu1 %v599_v17  ;;  %v334_v22 = vld [vmem:[%s3934_s1 + $0x280] sm:$0xff]  ;;  %817 = vmatpush1.msra.mxu0 %v342_v18 }
  0x26   : > { %v591_v21 = vld [vmem:[%s3934_s1 + $0xa88] sm:$0xff]  ;;  %v590_v23 = vld [vmem:[%s3934_s1 + $0xa80] sm:$0xff]  ;;  %894 = vmatpush1.msra.mxu1 %v598_v19  ;;  %818 = vmatprep.subr.mxu0 %v335_v20 }
  0x27   : > { %v327_v24 = vld [vmem:[%s3934_s1 + $0x248] sm:$0xff]  ;;  %895 = vmatprep.subr.mxu1 %v591_v21  ;;  %v326_v26 = vld [vmem:[%s3934_s1 + $0x240] sm:$0xff]  ;;  %819 = vmatpush1.msra.mxu0 %v334_v22 }
  0x28   : > { %v583_v25 = vld [vmem:[%s3934_s1 + $0xa48] sm:$0xff]  ;;  %v582_v27 = vld [vmem:[%s3934_s1 + $0xa40] sm:$0xff]  ;;  %896 = vmatpush1.msra.mxu1 %v590_v23  ;;  %820 = vmatprep.subr.mxu0 %v327_v24 }
  0x29   : > { %v319_v28 = vld [vmem:[%s3934_s1 + $0x208] sm:$0xff]  ;;  %897 = vmatprep.subr.mxu1 %v583_v25  ;;  %v318_v30 = vld [vmem:[%s3934_s1 + $0x200] sm:$0xff]  ;;  %821 = vmatpush1.msra.mxu0 %v326_v26 }
  0x2a   : > { %v575_v29 = vld [vmem:[%s3934_s1 + $0xa08] sm:$0xff]  ;;  %v574_v31 = vld [vmem:[%s3934_s1 + $0xa00] sm:$0xff]  ;;  %898 = vmatpush1.msra.mxu1 %v582_v27  ;;  %822 = vmatprep.subr.mxu0 %v319_v28 }
  0x2b   : > { %v311_v32 = vld [vmem:[%s3934_s1 + $0x1c8] sm:$0xff]  ;;  %899 = vmatprep.subr.mxu1 %v575_v29  ;;  %v310_v34 = vld [vmem:[%s3934_s1 + $0x1c0] sm:$0xff]  ;;  %823 = vmatpush1.msra.mxu0 %v318_v30 }
  0x2c   : > { %v567_v33 = vld [vmem:[%s3934_s1 + $0x9c8] sm:$0xff]  ;;  %v566_v35 = vld [vmem:[%s3934_s1 + $0x9c0] sm:$0xff]  ;;  %900 = vmatpush1.msra.mxu1 %v574_v31  ;;  %824 = vmatprep.subr.mxu0 %v311_v32 }
  0x2d   : > { %v303_v36 = vld [vmem:[%s3934_s1 + $0x188] sm:$0xff]  ;;  %901 = vmatprep.subr.mxu1 %v567_v33  ;;  %v302_v38 = vld [vmem:[%s3934_s1 + $0x180] sm:$0xff]  ;;  %825 = vmatpush1.msra.mxu0 %v310_v34 }
  0x2e   : > { %v559_v37 = vld [vmem:[%s3934_s1 + $0x988] sm:$0xff]  ;;  %v558_v39 = vld [vmem:[%s3934_s1 + $0x980] sm:$0xff]  ;;  %902 = vmatpush1.msra.mxu1 %v566_v35  ;;  %826 = vmatprep.subr.mxu0 %v303_v36 }
  0x2f   : > { %v295_v40 = vld [vmem:[%s3934_s1 + $0x148] sm:$0xff]  ;;  %903 = vmatprep.subr.mxu1 %v559_v37  ;;  %v294_v42 = vld [vmem:[%s3934_s1 + $0x140] sm:$0xff]  ;;  %827 = vmatpush1.msra.mxu0 %v302_v38 }
  0x30   : > { %v551_v41 = vld [vmem:[%s3934_s1 + $0x948] sm:$0xff]  ;;  %v550_v43 = vld [vmem:[%s3934_s1 + $0x940] sm:$0xff]  ;;  %904 = vmatpush1.msra.mxu1 %v558_v39  ;;  %828 = vmatprep.subr.mxu0 %v295_v40 }
  0x31   : > { %v287_v44 = vld [vmem:[%s3934_s1 + $0x108] sm:$0xff]  ;;  %905 = vmatprep.subr.mxu1 %v551_v41  ;;  %v286_v46 = vld [vmem:[%s3934_s1 + $0x100] sm:$0xff]  ;;  %829 = vmatpush1.msra.mxu0 %v294_v42 }
  0x32   : > { %v543_v45 = vld [vmem:[%s3934_s1 + $0x908] sm:$0xff]  ;;  %v542_v47 = vld [vmem:[%s3934_s1 + $0x900] sm:$0xff]  ;;  %906 = vmatpush1.msra.mxu1 %v550_v43  ;;  %830 = vmatprep.subr.mxu0 %v287_v44 }
  0x33   : > { %v279_v48 = vld [vmem:[%s3934_s1 + $0xc8] sm:$0xff]  ;;  %907 = vmatprep.subr.mxu1 %v543_v45  ;;  %v278_v50 = vld [vmem:[%s3934_s1 + $0xc0] sm:$0xff]  ;;  %831 = vmatpush1.msra.mxu0 %v286_v46 }
  0x34   : > { %v535_v49 = vld [vmem:[%s3934_s1 + $0x8c8] sm:$0xff]  ;;  %v534_v51 = vld [vmem:[%s3934_s1 + $0x8c0] sm:$0xff]  ;;  %908 = vmatpush1.msra.mxu1 %v542_v47  ;;  %832 = vmatprep.subr.mxu0 %v279_v48 }
  0x35   : > { %v271_v52 = vld [vmem:[%s3934_s1 + $0x88] sm:$0xff]  ;;  %909 = vmatprep.subr.mxu1 %v535_v49  ;;  %v270_v54 = vld [vmem:[%s3934_s1 + $0x80] sm:$0xff]  ;;  %833 = vmatpush1.msra.mxu0 %v278_v50 }
  0x36   : > { %v527_v53 = vld [vmem:[%s3934_s1 + $0x888] sm:$0xff]  ;;  %v526_v55 = vld [vmem:[%s3934_s1 + $0x880] sm:$0xff]  ;;  %910 = vmatpush1.msra.mxu1 %v534_v51  ;;  %834 = vmatprep.subr.mxu0 %v271_v52 }
  0x37   : > { %v263_v56 = vld [vmem:[%s3934_s1 + $0x48] sm:$0xff]  ;;  %911 = vmatprep.subr.mxu1 %v527_v53  ;;  %v262_v58 = vld [vmem:[%s3934_s1 + $0x40] sm:$0xff]  ;;  %835 = vmatpush1.msra.mxu0 %v270_v54 }
  0x38   : > { %v519_v57 = vld [vmem:[%s3934_s1 + $0x848] sm:$0xff]  ;;  %v518_v59 = vld [vmem:[%s3934_s1 + $0x840] sm:$0xff]  ;;  %912 = vmatpush1.msra.mxu1 %v526_v55  ;;  %836 = vmatprep.subr.mxu0 %v263_v56 }
  0x39   : > { %v255_v60 = vld [vmem:[%s3934_s1 + $0x8] sm:$0xff]  ;;  %913 = vmatprep.subr.mxu1 %v519_v57  ;;  %v254_v62 = vld [vmem:[%s3934_s1] sm:$0xff]  ;;  %837 = vmatpush1.msra.mxu0 %v262_v58 }
  0x3a   : > { %v511_v61 = vld [vmem:[%s3934_s1 + $0x808] sm:$0xff]  ;;  %v510_v63 = vld [vmem:[%s3934_s1 + $0x800] sm:$0xff]  ;;  %914 = vmatpush1.msra.mxu1 %v518_v59  ;;  %838 = vmatprep.subr.mxu0 %v255_v60 }
  0x3b   : > { %v503_v0 = vld [vmem:[%s3934_s1 + $0x7c8] sm:$0xff]  ;;  %915 = vmatprep.subr.mxu1 %v511_v61  ;;  %v502_v2 = vld [vmem:[%s3934_s1 + $0x7c0] sm:$0xff]  ;;  %839 = vmatpush1.msra.mxu0 %v254_v62 }
  0x3c   : > { %v759_v1 = vld [vmem:[%s3934_s1 + $0xfc8] sm:$0xff]  ;;  %v758_v3 = vld [vmem:[%s3934_s1 + $0xfc0] sm:$0xff]  ;;  %916 = vmatpush1.msra.mxu1 %v510_v63  ;;  %840 = vmatprep.subr.mxu0 %v503_v0 }
  0x3d   : > { %v495_v4 = vld [vmem:[%s3934_s1 + $0x788] sm:$0xff]  ;;  %917 = vmatprep.subr.mxu1 %v759_v1  ;;  %v494_v6 = vld [vmem:[%s3934_s1 + $0x780] sm:$0xff]  ;;  %841 = vmatpush2.msra.mxu0 %v502_v2  ;;  %v2673_v2 = vld [vmem:[%s2646_s23 + $0x18] sm:$0xff] }
  0x3e   : > { %v751_v5 = vld [vmem:[%s3934_s1 + $0xf88] sm:$0xff]  ;;  %v750_v7 = vld [vmem:[%s3934_s1 + $0xf80] sm:$0xff]  ;;  %918 = vmatpush2.msra.mxu1 %v758_v3  ;;  %842 = vmatprep.subr.mxu0 %v495_v4  ;;  %v377_v3 = vld [vmem:[%s3934_s1 + $0x3d8] sm:$0xff] }
  0x3f   : > { %v487_v8 = vld [vmem:[%s3934_s1 + $0x748] sm:$0xff]  ;;  %919 = vmatprep.subr.mxu1 %v751_v5  ;;  %v486_v10 = vld [vmem:[%s3934_s1 + $0x740] sm:$0xff]  ;;  %843 = vmatpush2.msra.mxu0 %v494_v6  ;;  %v633_v4 = vld [vmem:[%s3934_s1 + $0xbd8] sm:$0xff] }
  0x40   : > { %v743_v9 = vld [vmem:[%s3934_s1 + $0xf48] sm:$0xff]  ;;  %v742_v11 = vld [vmem:[%s3934_s1 + $0xf40] sm:$0xff]  ;;  %920 = vmatpush2.msra.mxu1 %v750_v7  ;;  %844 = vmatprep.subr.mxu0 %v487_v8  ;;  %v2683_v5 = vld [vmem:[%s2646_s23 + $0x10] sm:$0xff] }
  0x41   : > { %v479_v12 = vld [vmem:[%s3934_s1 + $0x708] sm:$0xff]  ;;  %921 = vmatprep.subr.mxu1 %v743_v9  ;;  %v478_v14 = vld [vmem:[%s3934_s1 + $0x700] sm:$0xff]  ;;  %845 = vmatpush2.msra.mxu0 %v486_v10  ;;  %v376_v6 = vld [vmem:[%s3934_s1 + $0x3d0] sm:$0xff] }
  0x42   : > { %v735_v13 = vld [vmem:[%s3934_s1 + $0xf08] sm:$0xff]  ;;  %v734_v15 = vld [vmem:[%s3934_s1 + $0xf00] sm:$0xff]  ;;  %922 = vmatpush2.msra.mxu1 %v742_v11  ;;  %846 = vmatprep.subr.mxu0 %v479_v12  ;;  %v632_v7 = vld [vmem:[%s3934_s1 + $0xbd0] sm:$0xff] }
  0x43   : > { %v471_v16 = vld [vmem:[%s3934_s1 + $0x6c8] sm:$0xff]  ;;  %923 = vmatprep.subr.mxu1 %v735_v13  ;;  %v470_v18 = vld [vmem:[%s3934_s1 + $0x6c0] sm:$0xff]  ;;  %847 = vmatpush2.msra.mxu0 %v478_v14  ;;  %v369_v8 = vld [vmem:[%s3934_s1 + $0x398] sm:$0xff] }
  0x44   : > { %v727_v17 = vld [vmem:[%s3934_s1 + $0xec8] sm:$0xff]  ;;  %v726_v19 = vld [vmem:[%s3934_s1 + $0xec0] sm:$0xff]  ;;  %924 = vmatpush2.msra.mxu1 %v734_v15  ;;  %848 = vmatprep.subr.mxu0 %v471_v16  ;;  %v625_v9 = vld [vmem:[%s3934_s1 + $0xb98] sm:$0xff] }
  0x45   : > { %v463_v20 = vld [vmem:[%s3934_s1 + $0x688] sm:$0xff]  ;;  %925 = vmatprep.subr.mxu1 %v727_v17  ;;  %v462_v22 = vld [vmem:[%s3934_s1 + $0x680] sm:$0xff]  ;;  %849 = vmatpush2.msra.mxu0 %v470_v18  ;;  %v368_v10 = vld [vmem:[%s3934_s1 + $0x390] sm:$0xff] }
  0x46   : > { %v719_v21 = vld [vmem:[%s3934_s1 + $0xe88] sm:$0xff]  ;;  %v718_v23 = vld [vmem:[%s3934_s1 + $0xe80] sm:$0xff]  ;;  %926 = vmatpush2.msra.mxu1 %v726_v19  ;;  %850 = vmatprep.subr.mxu0 %v463_v20  ;;  %v624_v11 = vld [vmem:[%s3934_s1 + $0xb90] sm:$0xff] }
  0x47   : > { %v455_v24 = vld [vmem:[%s3934_s1 + $0x648] sm:$0xff]  ;;  %927 = vmatprep.subr.mxu1 %v719_v21  ;;  %v454_v26 = vld [vmem:[%s3934_s1 + $0x640] sm:$0xff]  ;;  %851 = vmatpush2.msra.mxu0 %v462_v22  ;;  %v361_v12 = vld [vmem:[%s3934_s1 + $0x358] sm:$0xff] }
  0x48   : > { %v711_v25 = vld [vmem:[%s3934_s1 + $0xe48] sm:$0xff]  ;;  %v710_v27 = vld [vmem:[%s3934_s1 + $0xe40] sm:$0xff]  ;;  %928 = vmatpush2.msra.mxu1 %v718_v23  ;;  %852 = vmatprep.subr.mxu0 %v455_v24  ;;  %v617_v13 = vld [vmem:[%s3934_s1 + $0xb58] sm:$0xff] }
  0x49   : > { %v447_v28 = vld [vmem:[%s3934_s1 + $0x608] sm:$0xff]  ;;  %929 = vmatprep.subr.mxu1 %v711_v25  ;;  %v446_v30 = vld [vmem:[%s3934_s1 + $0x600] sm:$0xff]  ;;  %853 = vmatpush2.msra.mxu0 %v454_v26  ;;  %v360_v14 = vld [vmem:[%s3934_s1 + $0x350] sm:$0xff] }
  0x4a   : > { %v703_v29 = vld [vmem:[%s3934_s1 + $0xe08] sm:$0xff]  ;;  %v702_v31 = vld [vmem:[%s3934_s1 + $0xe00] sm:$0xff]  ;;  %930 = vmatpush2.msra.mxu1 %v710_v27  ;;  %854 = vmatprep.subr.mxu0 %v447_v28  ;;  %v616_v15 = vld [vmem:[%s3934_s1 + $0xb50] sm:$0xff] }
  0x4b   : > { %v439_v32 = vld [vmem:[%s3934_s1 + $0x5c8] sm:$0xff]  ;;  %931 = vmatprep.subr.mxu1 %v703_v29  ;;  %v438_v34 = vld [vmem:[%s3934_s1 + $0x5c0] sm:$0xff]  ;;  %855 = vmatpush2.msra.mxu0 %v446_v30  ;;  %v353_v16 = vld [vmem:[%s3934_s1 + $0x318] sm:$0xff] }
  0x4c   : > { %v695_v33 = vld [vmem:[%s3934_s1 + $0xdc8] sm:$0xff]  ;;  %v694_v35 = vld [vmem:[%s3934_s1 + $0xdc0] sm:$0xff]  ;;  %932 = vmatpush2.msra.mxu1 %v702_v31  ;;  %856 = vmatprep.subr.mxu0 %v439_v32  ;;  %v609_v17 = vld [vmem:[%s3934_s1 + $0xb18] sm:$0xff] }
  0x4d   : > { %v431_v36 = vld [vmem:[%s3934_s1 + $0x588] sm:$0xff]  ;;  %933 = vmatprep.subr.mxu1 %v695_v33  ;;  %v430_v38 = vld [vmem:[%s3934_s1 + $0x580] sm:$0xff]  ;;  %857 = vmatpush2.msra.mxu0 %v438_v34  ;;  %v352_v18 = vld [vmem:[%s3934_s1 + $0x310] sm:$0xff] }
  0x4e   : > { %v687_v37 = vld [vmem:[%s3934_s1 + $0xd88] sm:$0xff]  ;;  %v686_v39 = vld [vmem:[%s3934_s1 + $0xd80] sm:$0xff]  ;;  %934 = vmatpush2.msra.mxu1 %v694_v35  ;;  %858 = vmatprep.subr.mxu0 %v431_v36  ;;  %v608_v19 = vld [vmem:[%s3934_s1 + $0xb10] sm:$0xff] }
  0x4f   : > { %v423_v40 = vld [vmem:[%s3934_s1 + $0x548] sm:$0xff]  ;;  %935 = vmatprep.subr.mxu1 %v687_v37  ;;  %v422_v42 = vld [vmem:[%s3934_s1 + $0x540] sm:$0xff]  ;;  %859 = vmatpush2.msra.mxu0 %v430_v38  ;;  %v345_v20 = vld [vmem:[%s3934_s1 + $0x2d8] sm:$0xff] }
  0x50   : > { %v679_v41 = vld [vmem:[%s3934_s1 + $0xd48] sm:$0xff]  ;;  %v678_v43 = vld [vmem:[%s3934_s1 + $0xd40] sm:$0xff]  ;;  %936 = vmatpush2.msra.mxu1 %v686_v39  ;;  %860 = vmatprep.subr.mxu0 %v423_v40  ;;  %v601_v21 = vld [vmem:[%s3934_s1 + $0xad8] sm:$0xff] }
  0x51   : > { %v415_v44 = vld [vmem:[%s3934_s1 + $0x508] sm:$0xff]  ;;  %937 = vmatprep.subr.mxu1 %v679_v41  ;;  %v414_v46 = vld [vmem:[%s3934_s1 + $0x500] sm:$0xff]  ;;  %861 = vmatpush2.msra.mxu0 %v422_v42  ;;  %v344_v22 = vld [vmem:[%s3934_s1 + $0x2d0] sm:$0xff] }
  0x52   : > { %v671_v45 = vld [vmem:[%s3934_s1 + $0xd08] sm:$0xff]  ;;  %v670_v47 = vld [vmem:[%s3934_s1 + $0xd00] sm:$0xff]  ;;  %938 = vmatpush2.msra.mxu1 %v678_v43  ;;  %862 = vmatprep.subr.mxu0 %v415_v44  ;;  %v600_v23 = vld [vmem:[%s3934_s1 + $0xad0] sm:$0xff] }
  0x53   : > { %v407_v48 = vld [vmem:[%s3934_s1 + $0x4c8] sm:$0xff]  ;;  %939 = vmatprep.subr.mxu1 %v671_v45  ;;  %v406_v50 = vld [vmem:[%s3934_s1 + $0x4c0] sm:$0xff]  ;;  %863 = vmatpush2.msra.mxu0 %v414_v46  ;;  %v337_v24 = vld [vmem:[%s3934_s1 + $0x298] sm:$0xff] }
  0x54   : > { %v663_v49 = vld [vmem:[%s3934_s1 + $0xcc8] sm:$0xff]  ;;  %v662_v51 = vld [vmem:[%s3934_s1 + $0xcc0] sm:$0xff]  ;;  %940 = vmatpush2.msra.mxu1 %v670_v47  ;;  %864 = vmatprep.subr.mxu0 %v407_v48  ;;  %v593_v25 = vld [vmem:[%s3934_s1 + $0xa98] sm:$0xff] }
  0x55   : > { %v399_v52 = vld [vmem:[%s3934_s1 + $0x488] sm:$0xff]  ;;  %941 = vmatprep.subr.mxu1 %v663_v49  ;;  %v398_v54 = vld [vmem:[%s3934_s1 + $0x480] sm:$0xff]  ;;  %865 = vmatpush2.msra.mxu0 %v406_v50  ;;  %v336_v26 = vld [vmem:[%s3934_s1 + $0x290] sm:$0xff] }
  0x56   : > { %v655_v53 = vld [vmem:[%s3934_s1 + $0xc88] sm:$0xff]  ;;  %v654_v55 = vld [vmem:[%s3934_s1 + $0xc80] sm:$0xff]  ;;  %942 = vmatpush2.msra.mxu1 %v662_v51  ;;  %866 = vmatprep.subr.mxu0 %v399_v52  ;;  %v592_v27 = vld [vmem:[%s3934_s1 + $0xa90] sm:$0xff] }
  0x57   : > { %v391_v56 = vld [vmem:[%s3934_s1 + $0x448] sm:$0xff]  ;;  %943 = vmatprep.subr.mxu1 %v655_v53  ;;  %v390_v58 = vld [vmem:[%s3934_s1 + $0x440] sm:$0xff]  ;;  %867 = vmatpush2.msra.mxu0 %v398_v54  ;;  %v329_v28 = vld [vmem:[%s3934_s1 + $0x258] sm:$0xff] }
  0x58   : > { %v647_v57 = vld [vmem:[%s3934_s1 + $0xc48] sm:$0xff]  ;;  %v646_v59 = vld [vmem:[%s3934_s1 + $0xc40] sm:$0xff]  ;;  %944 = vmatpush2.msra.mxu1 %v654_v55  ;;  %868 = vmatprep.subr.mxu0 %v391_v56  ;;  %v585_v29 = vld [vmem:[%s3934_s1 + $0xa58] sm:$0xff] }
  0x59   : > { %v383_v60 = vld [vmem:[%s3934_s1 + $0x408] sm:$0xff]  ;;  %945 = vmatprep.subr.mxu1 %v647_v57  ;;  %v382_v62 = vld [vmem:[%s3934_s1 + $0x400] sm:$0xff]  ;;  %869 = vmatpush2.msra.mxu0 %v390_v58  ;;  %v328_v30 = vld [vmem:[%s3934_s1 + $0x250] sm:$0xff] }
  0x5a   : > { %v639_v61 = vld [vmem:[%s3934_s1 + $0xc08] sm:$0xff]  ;;  %946 = vmatpush2.msra.mxu1 %v646_v59  ;;  %v638_v0 = vld [vmem:[%s3934_s1 + $0xc00] sm:$0xff]  ;;  %870 = vmatprep.subr.mxu0 %v383_v60  ;;  %v584_v31 = vld [vmem:[%s3934_s1 + $0xa50] sm:$0xff] }
  0x5b   : > { %v2664_v63 = vld [vmem:[%s2646_s23 + $0x8] sm:$0xff]  ;;  %v2670_v1 = vld [vmem:[%s2646_s23] sm:$0xff]  ;;  %947 = vmatprep.subr.mxu1 %v639_v61  ;;  %871 = vmatpush2.msra.mxu0 %v382_v62  ;;  %v321_v32 = vld [vmem:[%s3934_s1 + $0x218] sm:$0xff] }
  0x5c   : > { %872 = vmatprep.mubr.f32.mxu0 %v2664_v63  ;;  %948 = vmatpush2.msra.mxu1 %v638_v0  ;;  %v577_v33 = vld [vmem:[%s3934_s1 + $0xa18] sm:$0xff]  ;;  %v320_v34 = vld [vmem:[%s3934_s1 + $0x210] sm:$0xff] }
  0x5d   : > { %873 = vmatmul.mubr.f32.vlgmr.msra.gmra.mxu0 %v2670_v1  ;;  %949 = vmatprep.mubr.f32.mxu1 %v2673_v2  ;;  %v576_v35 = vld [vmem:[%s3934_s1 + $0xa10] sm:$0xff]  ;;  %v313_v36 = vld [vmem:[%s3934_s1 + $0x1d8] sm:$0xff] }
  0x5e   : > { %962 = vmatprep.subr.mxu0 %v377_v3  ;;  %1039 = vmatprep.subr.mxu1 %v633_v4  ;;  %v569_v37 = vld [vmem:[%s3934_s1 + $0x9d8] sm:$0xff]  ;;  %v312_v38 = vld [vmem:[%s3934_s1 + $0x1d0] sm:$0xff] }
  0x5f   : > { %950 = vmatmul.mubr.f32.vlgmr.msra.gmra.mxu1 %v2683_v5  ;;  %963 = vmatpush1.msra.mxu0 %v376_v6  ;;  %v568_v39 = vld [vmem:[%s3934_s1 + $0x9d0] sm:$0xff]  ;;  %v305_v40 = vld [vmem:[%s3934_s1 + $0x198] sm:$0xff] }
  0x60   : > { %1040 = vmatpush1.msra.mxu1 %v632_v7  ;;  %964 = vmatprep.subr.mxu0 %v369_v8  ;;  %v561_v41 = vld [vmem:[%s3934_s1 + $0x998] sm:$0xff]  ;;  %v304_v42 = vld [vmem:[%s3934_s1 + $0x190] sm:$0xff] }
  0x61   : > { %1041 = vmatprep.subr.mxu1 %v625_v9  ;;  %965 = vmatpush1.msra.mxu0 %v368_v10  ;;  %v560_v43 = vld [vmem:[%s3934_s1 + $0x990] sm:$0xff]  ;;  %v297_v44 = vld [vmem:[%s3934_s1 + $0x158] sm:$0xff] }
  0x62   : > { %1042 = vmatpush1.msra.mxu1 %v624_v11  ;;  %966 = vmatprep.subr.mxu0 %v361_v12  ;;  %v553_v45 = vld [vmem:[%s3934_s1 + $0x958] sm:$0xff]  ;;  %v296_v46 = vld [vmem:[%s3934_s1 + $0x150] sm:$0xff] }
  0x63   : > { %1043 = vmatprep.subr.mxu1 %v617_v13  ;;  %967 = vmatpush1.msra.mxu0 %v360_v14  ;;  %v552_v47 = vld [vmem:[%s3934_s1 + $0x950] sm:$0xff]  ;;  %v289_v48 = vld [vmem:[%s3934_s1 + $0x118] sm:$0xff] }
  0x64   : > { %1044 = vmatpush1.msra.mxu1 %v616_v15  ;;  %968 = vmatprep.subr.mxu0 %v353_v16  ;;  %v545_v49 = vld [vmem:[%s3934_s1 + $0x918] sm:$0xff]  ;;  %v288_v50 = vld [vmem:[%s3934_s1 + $0x110] sm:$0xff] }
  0x65   : > { %1045 = vmatprep.subr.mxu1 %v609_v17  ;;  %969 = vmatpush1.msra.mxu0 %v352_v18  ;;  %v544_v51 = vld [vmem:[%s3934_s1 + $0x910] sm:$0xff]  ;;  %v281_v52 = vld [vmem:[%s3934_s1 + $0xd8] sm:$0xff] }
  0x66   : > { %1046 = vmatpush1.msra.mxu1 %v608_v19  ;;  %970 = vmatprep.subr.mxu0 %v345_v20  ;;  %v537_v53 = vld [vmem:[%s3934_s1 + $0x8d8] sm:$0xff]  ;;  %v280_v54 = vld [vmem:[%s3934_s1 + $0xd0] sm:$0xff] }
  0x67   : > { %1047 = vmatprep.subr.mxu1 %v601_v21  ;;  %971 = vmatpush1.msra.mxu0 %v344_v22  ;;  %v536_v55 = vld [vmem:[%s3934_s1 + $0x8d0] sm:$0xff]  ;;  %v273_v56 = vld [vmem:[%s3934_s1 + $0x98] sm:$0xff] }
  0x68   : > { %1048 = vmatpush1.msra.mxu1 %v600_v23  ;;  %972 = vmatprep.subr.mxu0 %v337_v24  ;;  %v529_v57 = vld [vmem:[%s3934_s1 + $0x898] sm:$0xff]  ;;  %v272_v58 = vld [vmem:[%s3934_s1 + $0x90] sm:$0xff] }
  0x69   : > { %1049 = vmatprep.subr.mxu1 %v593_v25  ;;  %973 = vmatpush1.msra.mxu0 %v336_v26  ;;  %v528_v59 = vld [vmem:[%s3934_s1 + $0x890] sm:$0xff]  ;;  %v265_v60 = vld [vmem:[%s3934_s1 + $0x58] sm:$0xff] }
  0x6a   : > { %1050 = vmatpush1.msra.mxu1 %v592_v27  ;;  %974 = vmatprep.subr.mxu0 %v329_v28  ;;  %v521_v61 = vld [vmem:[%s3934_s1 + $0x858] sm:$0xff]  ;;  %v264_v62 = vld [vmem:[%s3934_s1 + $0x50] sm:$0xff] }
  0x6b   : > { %1051 = vmatprep.subr.mxu1 %v585_v29  ;;  %975 = vmatpush1.msra.mxu0 %v328_v30  ;;  %v520_v0 = vld [vmem:[%s3934_s1 + $0x850] sm:$0xff]  ;;  %v257_v3 = vld [vmem:[%s3934_s1 + $0x18] sm:$0xff] }
  0x6c   : > { %1052 = vmatpush1.msra.mxu1 %v584_v31  ;;  %976 = vmatprep.subr.mxu0 %v321_v32  ;;  %v513_v4 = vld [vmem:[%s3934_s1 + $0x818] sm:$0xff]  ;;  %v256_v6 = vld [vmem:[%s3934_s1 + $0x10] sm:$0xff] }
  0x6d   : > { %1053 = vmatprep.subr.mxu1 %v577_v33  ;;  %977 = vmatpush1.msra.mxu0 %v320_v34  ;;  %v512_v7 = vld [vmem:[%s3934_s1 + $0x810] sm:$0xff]  ;;  %v505_v8 = vld [vmem:[%s3934_s1 + $0x7d8] sm:$0xff] }
  0x6e   : > { %1054 = vmatpush1.msra.mxu1 %v576_v35  ;;  %978 = vmatprep.subr.mxu0 %v313_v36  ;;  %v761_v9 = vld [vmem:[%s3934_s1 + $0xfd8] sm:$0xff]  ;;  %v504_v10 = vld [vmem:[%s3934_s1 + $0x7d0] sm:$0xff] }
  0x6f   : > { %1055 = vmatprep.subr.mxu1 %v569_v37  ;;  %979 = vmatpush1.msra.mxu0 %v312_v38  ;;  %v760_v11 = vld [vmem:[%s3934_s1 + $0xfd0] sm:$0xff]  ;;  %v497_v12 = vld [vmem:[%s3934_s1 + $0x798] sm:$0xff] }
  0x70   : > { %1056 = vmatpush1.msra.mxu1 %v568_v39  ;;  %980 = vmatprep.subr.mxu0 %v305_v40  ;;  %v753_v13 = vld [vmem:[%s3934_s1 + $0xf98] sm:$0xff]  ;;  %v496_v14 = vld [vmem:[%s3934_s1 + $0x790] sm:$0xff] }
  0x71   : > { %1057 = vmatprep.subr.mxu1 %v561_v41  ;;  %981 = vmatpush1.msra.mxu0 %v304_v42  ;;  %v752_v15 = vld [vmem:[%s3934_s1 + $0xf90] sm:$0xff]  ;;  %v489_v16 = vld [vmem:[%s3934_s1 + $0x758] sm:$0xff] }
  0x72   : > { %1058 = vmatpush1.msra.mxu1 %v560_v43  ;;  %982 = vmatprep.subr.mxu0 %v297_v44  ;;  %v745_v17 = vld [vmem:[%s3934_s1 + $0xf58] sm:$0xff]  ;;  %v488_v18 = vld [vmem:[%s3934_s1 + $0x750] sm:$0xff] }
  0x73   : > { %1059 = vmatprep.subr.mxu1 %v553_v45  ;;  %983 = vmatpush1.msra.mxu0 %v296_v46  ;;  %v744_v19 = vld [vmem:[%s3934_s1 + $0xf50] sm:$0xff]  ;;  %v481_v20 = vld [vmem:[%s3934_s1 + $0x718] sm:$0xff] }
  0x74   : > { %1060 = vmatpush1.msra.mxu1 %v552_v47  ;;  %984 = vmatprep.subr.mxu0 %v289_v48  ;;  %v737_v21 = vld [vmem:[%s3934_s1 + $0xf18] sm:$0xff]  ;;  %v480_v22 = vld [vmem:[%s3934_s1 + $0x710] sm:$0xff] }
  0x75   : > { %1061 = vmatprep.subr.mxu1 %v545_v49  ;;  %985 = vmatpush1.msra.mxu0 %v288_v50  ;;  %v736_v23 = vld [vmem:[%s3934_s1 + $0xf10] sm:$0xff]  ;;  %v473_v24 = vld [vmem:[%s3934_s1 + $0x6d8] sm:$0xff] }
  0x76   : > { %1062 = vmatpush1.msra.mxu1 %v544_v51  ;;  %986 = vmatprep.subr.mxu0 %v281_v52  ;;  %v729_v25 = vld [vmem:[%s3934_s1 + $0xed8] sm:$0xff]  ;;  %v472_v26 = vld [vmem:[%s3934_s1 + $0x6d0] sm:$0xff] }
  0x77   : > { %1063 = vmatprep.subr.mxu1 %v537_v53  ;;  %987 = vmatpush1.msra.mxu0 %v280_v54  ;;  %v728_v27 = vld [vmem:[%s3934_s1 + $0xed0] sm:$0xff]  ;;  %v465_v28 = vld [vmem:[%s3934_s1 + $0x698] sm:$0xff]  ;;  %v3013_v54 = vld [vmem:[%s2646_s23 + $0x28] sm:$0xff] }
  0x78   : > { %1064 = vmatpush1.msra.mxu1 %v536_v55  ;;  %988 = vmatprep.subr.mxu0 %v273_v56  ;;  %v721_v29 = vld [vmem:[%s3934_s1 + $0xe98] sm:$0xff]  ;;  %v464_v30 = vld [vmem:[%s3934_s1 + $0x690] sm:$0xff] }
  0x79   : > { %1065 = vmatprep.subr.mxu1 %v529_v57  ;;  %989 = vmatpush1.msra.mxu0 %v272_v58  ;;  %v720_v31 = vld [vmem:[%s3934_s1 + $0xe90] sm:$0xff]  ;;  %v457_v32 = vld [vmem:[%s3934_s1 + $0x658] sm:$0xff]  ;;  %v3022_v57 = vld [vmem:[%s2646_s23 + $0x20] sm:$0xff] }
  0x7a   : > { %1066 = vmatpush1.msra.mxu1 %v528_v59  ;;  %990 = vmatprep.subr.mxu0 %v265_v60  ;;  %v713_v33 = vld [vmem:[%s3934_s1 + $0xe58] sm:$0xff]  ;;  %v456_v34 = vld [vmem:[%s3934_s1 + $0x650] sm:$0xff] }
  0x7b   : > { %1067 = vmatprep.subr.mxu1 %v521_v61  ;;  %991 = vmatpush1.msra.mxu0 %v264_v62  ;;  %v712_v35 = vld [vmem:[%s3934_s1 + $0xe50] sm:$0xff]  ;;  %v449_v36 = vld [vmem:[%s3934_s1 + $0x618] sm:$0xff] }
  0x7c   : > { %1068 = vmatpush1.msra.mxu1 %v520_v0  ;;  %992 = vmatprep.subr.mxu0 %v257_v3  ;;  %v705_v37 = vld [vmem:[%s3934_s1 + $0xe18] sm:$0xff]  ;;  %v448_v38 = vld [vmem:[%s3934_s1 + $0x610] sm:$0xff] }
  0x7d   : > { %1069 = vmatprep.subr.mxu1 %v513_v4  ;;  %993 = vmatpush1.msra.mxu0 %v256_v6  ;;  %v704_v39 = vld [vmem:[%s3934_s1 + $0xe10] sm:$0xff]  ;;  %v441_v40 = vld [vmem:[%s3934_s1 + $0x5d8] sm:$0xff] }
  0x7e   : > { %1070 = vmatpush1.msra.mxu1 %v512_v7  ;;  %994 = vmatprep.subr.mxu0 %v505_v8  ;;  %v697_v41 = vld [vmem:[%s3934_s1 + $0xdd8] sm:$0xff]  ;;  %v440_v42 = vld [vmem:[%s3934_s1 + $0x5d0] sm:$0xff] }
  0x7f   : > { %1071 = vmatprep.subr.mxu1 %v761_v9  ;;  %995 = vmatpush2.msra.mxu0 %v504_v10  ;;  %v696_v43 = vld [vmem:[%s3934_s1 + $0xdd0] sm:$0xff]  ;;  %v433_v44 = vld [vmem:[%s3934_s1 + $0x598] sm:$0xff] }
  0x80   : > { %1072 = vmatpush2.msra.mxu1 %v760_v11  ;;  %996 = vmatprep.subr.mxu0 %v497_v12  ;;  %v689_v45 = vld [vmem:[%s3934_s1 + $0xd98] sm:$0xff]  ;;  %v432_v46 = vld [vmem:[%s3934_s1 + $0x590] sm:$0xff] }
  0x81   : > { %1073 = vmatprep.subr.mxu1 %v753_v13  ;;  %997 = vmatpush2.msra.mxu0 %v496_v14  ;;  %v688_v47 = vld [vmem:[%s3934_s1 + $0xd90] sm:$0xff]  ;;  %v425_v48 = vld [vmem:[%s3934_s1 + $0x558] sm:$0xff] }
  0x82   : > { %1074 = vmatpush2.msra.mxu1 %v752_v15  ;;  %998 = vmatprep.subr.mxu0 %v489_v16  ;;  %v681_v49 = vld [vmem:[%s3934_s1 + $0xd58] sm:$0xff]  ;;  %v424_v50 = vld [vmem:[%s3934_s1 + $0x550] sm:$0xff]  ;;  %v379_v16 = vld [vmem:[%s3934_s1 + $0x3e8] sm:$0xff] }
  0x83   : > { %1075 = vmatprep.subr.mxu1 %v745_v17  ;;  %999 = vmatpush2.msra.mxu0 %v488_v18  ;;  %v680_v51 = vld [vmem:[%s3934_s1 + $0xd50] sm:$0xff]  ;;  %v417_v52 = vld [vmem:[%s3934_s1 + $0x518] sm:$0xff]  ;;  %v635_v17 = vld [vmem:[%s3934_s1 + $0xbe8] sm:$0xff] }
  0x84   : > { %1076 = vmatpush2.msra.mxu1 %v744_v19  ;;  %1000 = vmatprep.subr.mxu0 %v481_v20  ;;  %v673_v53 = vld [vmem:[%s3934_s1 + $0xd18] sm:$0xff]  ;;  %v416_v55 = vld [vmem:[%s3934_s1 + $0x510] sm:$0xff]  ;;  %v378_v18 = vld [vmem:[%s3934_s1 + $0x3e0] sm:$0xff] }
  0x85   : > { %1077 = vmatprep.subr.mxu1 %v737_v21  ;;  %1001 = vmatpush2.msra.mxu0 %v480_v22  ;;  %v672_v56 = vld [vmem:[%s3934_s1 + $0xd10] sm:$0xff]  ;;  %v409_v58 = vld [vmem:[%s3934_s1 + $0x4d8] sm:$0xff]  ;;  %v634_v19 = vld [vmem:[%s3934_s1 + $0xbe0] sm:$0xff] }
  0x86   : > { %1078 = vmatpush2.msra.mxu1 %v736_v23  ;;  %1002 = vmatprep.subr.mxu0 %v473_v24  ;;  %v665_v59 = vld [vmem:[%s3934_s1 + $0xcd8] sm:$0xff]  ;;  %v408_v61 = vld [vmem:[%s3934_s1 + $0x4d0] sm:$0xff]  ;;  %v627_v20 = vld [vmem:[%s3934_s1 + $0xba8] sm:$0xff] }
  0x87   : > { %1079 = vmatprep.subr.mxu1 %v729_v25  ;;  %1003 = vmatpush2.msra.mxu0 %v472_v26  ;;  %v3032_v60 = vld [vmem:[%s2646_s23 + $0x38] sm:$0xff]  ;;  %v664_v62 = vld [vmem:[%s3934_s1 + $0xcd0] sm:$0xff]  ;;  %v363_v21 = vld [vmem:[%s3934_s1 + $0x368] sm:$0xff] }
  0x88   : > { %1080 = vmatpush2.msra.mxu1 %v728_v27  ;;  %1004 = vmatprep.subr.mxu0 %v465_v28  ;;  %v401_v0 = vld [vmem:[%s3934_s1 + $0x498] sm:$0xff]  ;;  %v3045_v3 = vld [vmem:[%s2646_s23 + $0x30] sm:$0xff]  ;;  %v362_v22 = vld [vmem:[%s3934_s1 + $0x360] sm:$0xff] }
  0x89   : > { %1081 = vmatprep.subr.mxu1 %v721_v29  ;;  %1005 = vmatpush2.msra.mxu0 %v464_v30  ;;  %v657_v4 = vld [vmem:[%s3934_s1 + $0xc98] sm:$0xff]  ;;  %v400_v6 = vld [vmem:[%s3934_s1 + $0x490] sm:$0xff]  ;;  %v618_v23 = vld [vmem:[%s3934_s1 + $0xb60] sm:$0xff] }
  0x8a   : > { %1082 = vmatpush2.msra.mxu1 %v720_v31  ;;  %1006 = vmatprep.subr.mxu0 %v457_v32  ;;  %v656_v7 = vld [vmem:[%s3934_s1 + $0xc90] sm:$0xff]  ;;  %v393_v8 = vld [vmem:[%s3934_s1 + $0x458] sm:$0xff]  ;;  %v355_v24 = vld [vmem:[%s3934_s1 + $0x328] sm:$0xff] }
  0x8b   : > { %1083 = vmatprep.subr.mxu1 %v713_v33  ;;  %1007 = vmatpush2.msra.mxu0 %v456_v34  ;;  %v649_v9 = vld [vmem:[%s3934_s1 + $0xc58] sm:$0xff]  ;;  %v392_v10 = vld [vmem:[%s3934_s1 + $0x450] sm:$0xff]  ;;  %v611_v25 = vld [vmem:[%s3934_s1 + $0xb28] sm:$0xff] }
  0x8c   : > { %1084 = vmatpush2.msra.mxu1 %v712_v35  ;;  %1008 = vmatprep.subr.mxu0 %v449_v36  ;;  %v648_v11 = vld [vmem:[%s3934_s1 + $0xc50] sm:$0xff]  ;;  %v385_v12 = vld [vmem:[%s3934_s1 + $0x418] sm:$0xff]  ;;  %v354_v26 = vld [vmem:[%s3934_s1 + $0x320] sm:$0xff] }
  0x8d   : > { %1085 = vmatprep.subr.mxu1 %v705_v37  ;;  %1009 = vmatpush2.msra.mxu0 %v448_v38  ;;  %v641_v13 = vld [vmem:[%s3934_s1 + $0xc18] sm:$0xff]  ;;  %v384_v14 = vld [vmem:[%s3934_s1 + $0x410] sm:$0xff]  ;;  %v610_v27 = vld [vmem:[%s3934_s1 + $0xb20] sm:$0xff] }
  0x8e   : > { %1086 = vmatpush2.msra.mxu1 %v704_v39  ;;  %1010 = vmatprep.subr.mxu0 %v441_v40  ;;  %v640_v15 = vld [vmem:[%s3934_s1 + $0xc10] sm:$0xff]  ;;  %v347_v28 = vld [vmem:[%s3934_s1 + $0x2e8] sm:$0xff]  ;;  %v346_v30 = vld [vmem:[%s3934_s1 + $0x2e0] sm:$0xff] }
  0x8f   : > { %1087 = vmatprep.subr.mxu1 %v697_v41  ;;  %1011 = vmatpush2.msra.mxu0 %v440_v42  ;;  %v603_v29 = vld [vmem:[%s3934_s1 + $0xae8] sm:$0xff]  ;;  %v602_v31 = vld [vmem:[%s3934_s1 + $0xae0] sm:$0xff] }
  0x90   : > { %1088 = vmatpush2.msra.mxu1 %v696_v43  ;;  %1012 = vmatprep.subr.mxu0 %v433_v44  ;;  %v339_v32 = vld [vmem:[%s3934_s1 + $0x2a8] sm:$0xff]  ;;  %v338_v34 = vld [vmem:[%s3934_s1 + $0x2a0] sm:$0xff] }
  0x91   : > { %1089 = vmatprep.subr.mxu1 %v689_v45  ;;  %1013 = vmatpush2.msra.mxu0 %v432_v46  ;;  %v595_v33 = vld [vmem:[%s3934_s1 + $0xaa8] sm:$0xff]  ;;  %v594_v35 = vld [vmem:[%s3934_s1 + $0xaa0] sm:$0xff] }
  0x92   : > { %1090 = vmatpush2.msra.mxu1 %v688_v47  ;;  %1014 = vmatprep.subr.mxu0 %v425_v48  ;;  %v331_v36 = vld [vmem:[%s3934_s1 + $0x268] sm:$0xff]  ;;  %v330_v38 = vld [vmem:[%s3934_s1 + $0x260] sm:$0xff] }
  0x93   : > { %1091 = vmatprep.subr.mxu1 %v681_v49  ;;  %1015 = vmatpush2.msra.mxu0 %v424_v50  ;;  %v587_v37 = vld [vmem:[%s3934_s1 + $0xa68] sm:$0xff]  ;;  %v586_v39 = vld [vmem:[%s3934_s1 + $0xa60] sm:$0xff] }
  0x94   : > { %1092 = vmatpush2.msra.mxu1 %v680_v51  ;;  %1016 = vmatprep.subr.mxu0 %v417_v52  ;;  %v323_v40 = vld [vmem:[%s3934_s1 + $0x228] sm:$0xff]  ;;  %v322_v42 = vld [vmem:[%s3934_s1 + $0x220] sm:$0xff] }
  0x95   : > { %1093 = vmatprep.subr.mxu1 %v673_v53  ;;  %878 = vmatprep.mubr.f32.mxu0 %v3013_v54  ;;  %v579_v41 = vld [vmem:[%s3934_s1 + $0xa28] sm:$0xff]  ;;  %v578_v43 = vld [vmem:[%s3934_s1 + $0xa20] sm:$0xff] }
  0x96   : > { %1017 = vmatpush2.msra.mxu0 %v416_v55  ;;  %1094 = vmatpush2.msra.mxu1 %v672_v56  ;;  %v315_v44 = vld [vmem:[%s3934_s1 + $0x1e8] sm:$0xff]  ;;  %v314_v46 = vld [vmem:[%s3934_s1 + $0x1e0] sm:$0xff] }
  0x97   : > { %879 = vmatmul.mubr.f32.gmra.mxu0 %v3022_v57  ;;  %1018 = vmatprep.subr.mxu0 %v409_v58  ;;  %v571_v45 = vld [vmem:[%s3934_s1 + $0x9e8] sm:$0xff]  ;;  %v570_v47 = vld [vmem:[%s3934_s1 + $0x9e0] sm:$0xff] }
  0x98   : > { %1095 = vmatprep.subr.mxu1 %v665_v59  ;;  %955 = vmatprep.mubr.f32.mxu1 %v3032_v60  ;;  %v307_v48 = vld [vmem:[%s3934_s1 + $0x1a8] sm:$0xff]  ;;  %v306_v50 = vld [vmem:[%s3934_s1 + $0x1a0] sm:$0xff] }
  0x99   : > { %1019 = vmatpush2.msra.mxu0 %v408_v61  ;;  %1096 = vmatpush2.msra.mxu1 %v664_v62  ;;  %v563_v49 = vld [vmem:[%s3934_s1 + $0x9a8] sm:$0xff]  ;;  %v562_v51 = vld [vmem:[%s3934_s1 + $0x9a0] sm:$0xff] }
  0x9a   : > { %1020 = vmatprep.subr.mxu0 %v401_v0  ;;  %956 = vmatmul.mubr.f32.gmra.mxu1 %v3045_v3  ;;  %v299_v52 = vld [vmem:[%s3934_s1 + $0x168] sm:$0xff]  ;;  %v298_v55 = vld [vmem:[%s3934_s1 + $0x160] sm:$0xff] }
  0x9b   : > { %1097 = vmatprep.subr.mxu1 %v657_v4  ;;  %1021 = vmatpush2.msra.mxu0 %v400_v6  ;;  %v555_v53 = vld [vmem:[%s3934_s1 + $0x968] sm:$0xff]  ;;  %v554_v56 = vld [vmem:[%s3934_s1 + $0x960] sm:$0xff] }
  0x9c   : > { %1098 = vmatpush2.msra.mxu1 %v656_v7  ;;  %1022 = vmatprep.subr.mxu0 %v393_v8  ;;  %v291_v58 = vld [vmem:[%s3934_s1 + $0x128] sm:$0xff]  ;;  %v290_v61 = vld [vmem:[%s3934_s1 + $0x120] sm:$0xff] }
  0x9d   : > { %1099 = vmatprep.subr.mxu1 %v649_v9  ;;  %1023 = vmatpush2.msra.mxu0 %v392_v10  ;;  %v547_v59 = vld [vmem:[%s3934_s1 + $0x928] sm:$0xff]  ;;  %v546_v62 = vld [vmem:[%s3934_s1 + $0x920] sm:$0xff] }
  0x9e   : > { %1100 = vmatpush2.msra.mxu1 %v648_v11  ;;  %1024 = vmatprep.subr.mxu0 %v385_v12  ;;  %v283_v0 = vld [vmem:[%s3934_s1 + $0xe8] sm:$0xff]  ;;  %v282_v6 = vld [vmem:[%s3934_s1 + $0xe0] sm:$0xff] }
  0x9f   : > { %1101 = vmatprep.subr.mxu1 %v641_v13  ;;  %1025 = vmatpush2.msra.mxu0 %v384_v14  ;;  %v539_v4 = vld [vmem:[%s3934_s1 + $0x8e8] sm:$0xff]  ;;  %v538_v7 = vld [vmem:[%s3934_s1 + $0x8e0] sm:$0xff] }
  0xa0   : > { %1026 = vmatprep.mubr.f32.mxu0 %v2664_v63  ;;  %1102 = vmatpush2.msra.mxu1 %v640_v15  ;;  %v371_v63 = vld [vmem:[%s3934_s1 + $0x3a8] sm:$0xff]  ;;  %v274_v10 = vld [vmem:[%s3934_s1 + $0xa0] sm:$0xff] }
  0xa1   : > { %1027 = vmatmul.mubr.f32.vlgmr.msra.gmra.mxu0 %v2670_v1  ;;  %1103 = vmatprep.mubr.f32.mxu1 %v2673_v2  ;;  %v370_v1 = vld [vmem:[%s3934_s1 + $0x3a0] sm:$0xff]  ;;  %v275_v8 = vld [vmem:[%s3934_s1 + $0xa8] sm:$0xff] }
  0xa2   : > { %1116 = vmatprep.subr.mxu0 %v379_v16  ;;  %1193 = vmatprep.subr.mxu1 %v635_v17  ;;  %v626_v2 = vld [vmem:[%s3934_s1 + $0xba0] sm:$0xff]  ;;  %v531_v9 = vld [vmem:[%s3934_s1 + $0x8a8] sm:$0xff] }
  0xa3   : > { %1104 = vmatmul.mubr.f32.vlgmr.msra.gmra.mxu1 %v2683_v5  ;;  %1117 = vmatpush1.msra.mxu0 %v378_v18  ;;  %v619_v5 = vld [vmem:[%s3934_s1 + $0xb68] sm:$0xff]  ;;  %v530_v11 = vld [vmem:[%s3934_s1 + $0x8a0] sm:$0xff] }
  0xa4   : > { %1194 = vmatpush1.msra.mxu1 %v634_v19  ;;  %1118 = vmatprep.subr.mxu0 %v371_v63  ;;  %v267_v12 = vld [vmem:[%s3934_s1 + $0x68] sm:$0xff]  ;;  %v266_v14 = vld [vmem:[%s3934_s1 + $0x60] sm:$0xff] }
  0xa5   : > { %1195 = vmatprep.subr.mxu1 %v627_v20  ;;  %1032 = vmatprep.mubr.f32.mxu0 %v3013_v54  ;;  %v523_v13 = vld [vmem:[%s3934_s1 + $0x868] sm:$0xff]  ;;  %v522_v15 = vld [vmem:[%s3934_s1 + $0x860] sm:$0xff] }
  0xa6   : > { %1119 = vmatpush1.msra.mxu0 %v370_v1  ;;  %1196 = vmatpush1.msra.mxu1 %v626_v2  ;;  %v259_v16 = vld [vmem:[%s3934_s1 + $0x28] sm:$0xff]  ;;  %v258_v18 = vld [vmem:[%s3934_s1 + $0x20] sm:$0xff] }
  0xa7   : > { %1033 = vmatmul.mubr.f32.gmra.mxu0 %v3022_v57  ;;  %1120 = vmatprep.subr.mxu0 %v363_v21  ;;  %v515_v17 = vld [vmem:[%s3934_s1 + $0x828] sm:$0xff]  ;;  %v514_v19 = vld [vmem:[%s3934_s1 + $0x820] sm:$0xff] }
  0xa8   : > { %1197 = vmatprep.subr.mxu1 %v619_v5  ;;  %1109 = vmatprep.mubr.f32.mxu1 %v3032_v60  ;;  %v507_v63 = vld [vmem:[%s3934_s1 + $0x7e8] sm:$0xff]  ;;  %v506_v1 = vld [vmem:[%s3934_s1 + $0x7e0] sm:$0xff] }
  0xa9   : > { %1121 = vmatpush1.msra.mxu0 %v362_v22  ;;  %1198 = vmatpush1.msra.mxu1 %v618_v23  ;;  %v763_v20 = vld [vmem:[%s3934_s1 + $0xfe8] sm:$0xff]  ;;  %v762_v2 = vld [vmem:[%s3934_s1 + $0xfe0] sm:$0xff] }
  0xaa   : > { %1122 = vmatprep.subr.mxu0 %v355_v24  ;;  %1110 = vmatmul.mubr.f32.gmra.mxu1 %v3045_v3  ;;  %v499_v21 = vld [vmem:[%s3934_s1 + $0x7a8] sm:$0xff]  ;;  %v498_v22 = vld [vmem:[%s3934_s1 + $0x7a0] sm:$0xff] }
  0xab   : > { %1199 = vmatprep.subr.mxu1 %v611_v25  ;;  %1123 = vmatpush1.msra.mxu0 %v354_v26  ;;  %v755_v5 = vld [vmem:[%s3934_s1 + $0xfa8] sm:$0xff]  ;;  %v754_v23 = vld [vmem:[%s3934_s1 + $0xfa0] sm:$0xff] }
  0xac   : > { %1200 = vmatpush1.msra.mxu1 %v610_v27  ;;  %1124 = vmatprep.subr.mxu0 %v347_v28  ;;  %v491_v24 = vld [vmem:[%s3934_s1 + $0x768] sm:$0xff]  ;;  %v490_v26 = vld [vmem:[%s3934_s1 + $0x760] sm:$0xff] }
  0xad   : > { %1201 = vmatprep.subr.mxu1 %v603_v29  ;;  %1125 = vmatpush1.msra.mxu0 %v346_v30  ;;  %v747_v25 = vld [vmem:[%s3934_s1 + $0xf68] sm:$0xff]  ;;  %v746_v27 = vld [vmem:[%s3934_s1 + $0xf60] sm:$0xff] }
  0xae   : > { %1202 = vmatpush1.msra.mxu1 %v602_v31  ;;  %1126 = vmatprep.subr.mxu0 %v339_v32  ;;  %v483_v28 = vld [vmem:[%s3934_s1 + $0x728] sm:$0xff]  ;;  %v482_v30 = vld [vmem:[%s3934_s1 + $0x720] sm:$0xff] }
  0xaf   : > { %1203 = vmatprep.subr.mxu1 %v595_v33  ;;  %1127 = vmatpush1.msra.mxu0 %v338_v34  ;;  %v739_v29 = vld [vmem:[%s3934_s1 + $0xf28] sm:$0xff]  ;;  %v738_v31 = vld [vmem:[%s3934_s1 + $0xf20] sm:$0xff] }
  0xb0   : > { %1204 = vmatpush1.msra.mxu1 %v594_v35  ;;  %1128 = vmatprep.subr.mxu0 %v331_v36  ;;  %v475_v32 = vld [vmem:[%s3934_s1 + $0x6e8] sm:$0xff]  ;;  %v474_v34 = vld [vmem:[%s3934_s1 + $0x6e0] sm:$0xff] }
  0xb1   : > { %1205 = vmatprep.subr.mxu1 %v587_v37  ;;  %1129 = vmatpush1.msra.mxu0 %v330_v38  ;;  %v731_v33 = vld [vmem:[%s3934_s1 + $0xee8] sm:$0xff]  ;;  %v730_v35 = vld [vmem:[%s3934_s1 + $0xee0] sm:$0xff] }
  0xb2   : > { %1206 = vmatpush1.msra.mxu1 %v586_v39  ;;  %1130 = vmatprep.subr.mxu0 %v323_v40  ;;  %v467_v36 = vld [vmem:[%s3934_s1 + $0x6a8] sm:$0xff]  ;;  %v466_v38 = vld [vmem:[%s3934_s1 + $0x6a0] sm:$0xff] }
  0xb3   : > { %1207 = vmatprep.subr.mxu1 %v579_v41  ;;  %1131 = vmatpush1.msra.mxu0 %v322_v42  ;;  %v723_v37 = vld [vmem:[%s3934_s1 + $0xea8] sm:$0xff]  ;;  %v722_v39 = vld [vmem:[%s3934_s1 + $0xea0] sm:$0xff] }
  0xb4   : > { %1208 = vmatpush1.msra.mxu1 %v578_v43  ;;  %1132 = vmatprep.subr.mxu0 %v315_v44  ;;  %v459_v40 = vld [vmem:[%s3934_s1 + $0x668] sm:$0xff]  ;;  %v458_v42 = vld [vmem:[%s3934_s1 + $0x660] sm:$0xff] }
  0xb5   : > { %1209 = vmatprep.subr.mxu1 %v571_v45  ;;  %1133 = vmatpush1.msra.mxu0 %v314_v46  ;;  %v715_v41 = vld [vmem:[%s3934_s1 + $0xe68] sm:$0xff]  ;;  %v714_v43 = vld [vmem:[%s3934_s1 + $0xe60] sm:$0xff] }
  0xb6   : > { %1210 = vmatpush1.msra.mxu1 %v570_v47  ;;  %1134 = vmatprep.subr.mxu0 %v307_v48  ;;  %v451_v44 = vld [vmem:[%s3934_s1 + $0x628] sm:$0xff]  ;;  %v450_v46 = vld [vmem:[%s3934_s1 + $0x620] sm:$0xff] }
  0xb7   : > { %1211 = vmatprep.subr.mxu1 %v563_v49  ;;  %1135 = vmatpush1.msra.mxu0 %v306_v50  ;;  %v707_v45 = vld [vmem:[%s3934_s1 + $0xe28] sm:$0xff]  ;;  %v706_v47 = vld [vmem:[%s3934_s1 + $0xe20] sm:$0xff] }
  0xb8   : > { %1212 = vmatpush1.msra.mxu1 %v562_v51  ;;  %1136 = vmatprep.subr.mxu0 %v299_v52  ;;  %v443_v48 = vld [vmem:[%s3934_s1 + $0x5e8] sm:$0xff]  ;;  %v442_v50 = vld [vmem:[%s3934_s1 + $0x5e0] sm:$0xff] }
  0xb9   : > { %1213 = vmatprep.subr.mxu1 %v555_v53  ;;  %1137 = vmatpush1.msra.mxu0 %v298_v55  ;;  %v699_v49 = vld [vmem:[%s3934_s1 + $0xde8] sm:$0xff]  ;;  %v698_v51 = vld [vmem:[%s3934_s1 + $0xde0] sm:$0xff] }
  0xba   : > { %1214 = vmatpush1.msra.mxu1 %v554_v56  ;;  %1138 = vmatprep.subr.mxu0 %v291_v58  ;;  %v435_v52 = vld [vmem:[%s3934_s1 + $0x5a8] sm:$0xff]  ;;  %v434_v55 = vld [vmem:[%s3934_s1 + $0x5a0] sm:$0xff] }
  0xbb   : > { %1215 = vmatprep.subr.mxu1 %v547_v59  ;;  %1139 = vmatpush1.msra.mxu0 %v290_v61  ;;  %v691_v53 = vld [vmem:[%s3934_s1 + $0xda8] sm:$0xff]  ;;  %v690_v56 = vld [vmem:[%s3934_s1 + $0xda0] sm:$0xff] }
  0xbc   : > { %1216 = vmatpush1.msra.mxu1 %v546_v62  ;;  %1140 = vmatprep.subr.mxu0 %v283_v0  ;;  %v427_v58 = vld [vmem:[%s3934_s1 + $0x568] sm:$0xff]  ;;  %v426_v61 = vld [vmem:[%s3934_s1 + $0x560] sm:$0xff] }
  0xbd   : > { %1217 = vmatprep.subr.mxu1 %v539_v4  ;;  %1141 = vmatpush1.msra.mxu0 %v282_v6  ;;  %v683_v59 = vld [vmem:[%s3934_s1 + $0xd68] sm:$0xff]  ;;  %v682_v62 = vld [vmem:[%s3934_s1 + $0xd60] sm:$0xff] }
  0xbe   : > { %1218 = vmatpush1.msra.mxu1 %v538_v7  ;;  %1142 = vmatprep.subr.mxu0 %v275_v8  ;;  %v419_v0 = vld [vmem:[%s3934_s1 + $0x528] sm:$0xff]  ;;  %v418_v6 = vld [vmem:[%s3934_s1 + $0x520] sm:$0xff] }
  0xbf   : > { %1219 = vmatprep.subr.mxu1 %v531_v9  ;;  %1143 = vmatpush1.msra.mxu0 %v274_v10  ;;  %v675_v4 = vld [vmem:[%s3934_s1 + $0xd28] sm:$0xff]  ;;  %v674_v7 = vld [vmem:[%s3934_s1 + $0xd20] sm:$0xff] }
  0xc0   : > { %1220 = vmatpush1.msra.mxu1 %v530_v11  ;;  %1144 = vmatprep.subr.mxu0 %v267_v12  ;;  %v411_v8 = vld [vmem:[%s3934_s1 + $0x4e8] sm:$0xff]  ;;  %v410_v10 = vld [vmem:[%s3934_s1 + $0x4e0] sm:$0xff] }
  0xc1   : > { %1221 = vmatprep.subr.mxu1 %v523_v13  ;;  %1145 = vmatpush1.msra.mxu0 %v266_v14  ;;  %v667_v9 = vld [vmem:[%s3934_s1 + $0xce8] sm:$0xff]  ;;  %v666_v11 = vld [vmem:[%s3934_s1 + $0xce0] sm:$0xff] }
  0xc2   : > { %1222 = vmatpush1.msra.mxu1 %v522_v15  ;;  %1146 = vmatprep.subr.mxu0 %v259_v16  ;;  %v403_v12 = vld [vmem:[%s3934_s1 + $0x4a8] sm:$0xff]  ;;  %v402_v14 = vld [vmem:[%s3934_s1 + $0x4a0] sm:$0xff] }
  0xc3   : > { %1223 = vmatprep.subr.mxu1 %v515_v17  ;;  %1147 = vmatpush1.msra.mxu0 %v258_v18  ;;  %v659_v13 = vld [vmem:[%s3934_s1 + $0xca8] sm:$0xff]  ;;  %v658_v15 = vld [vmem:[%s3934_s1 + $0xca0] sm:$0xff] }
  0xc4   : > { %1224 = vmatpush1.msra.mxu1 %v514_v19  ;;  %1148 = vmatprep.subr.mxu0 %v507_v63  ;;  %v395_v16 = vld [vmem:[%s3934_s1 + $0x468] sm:$0xff]  ;;  %v394_v18 = vld [vmem:[%s3934_s1 + $0x460] sm:$0xff] }
  0xc5   : > { %1225 = vmatprep.subr.mxu1 %v763_v20  ;;  %1149 = vmatpush2.msra.mxu0 %v506_v1  ;;  %v651_v17 = vld [vmem:[%s3934_s1 + $0xc68] sm:$0xff]  ;;  %v650_v19 = vld [vmem:[%s3934_s1 + $0xc60] sm:$0xff] }
  0xc6   : > { %1226 = vmatpush2.msra.mxu1 %v762_v2  ;;  %1150 = vmatprep.subr.mxu0 %v499_v21  ;;  %v387_v63 = vld [vmem:[%s3934_s1 + $0x428] sm:$0xff]  ;;  %v386_v1 = vld [vmem:[%s3934_s1 + $0x420] sm:$0xff]  ;;  %v381_v21 = vld [vmem:[%s3934_s1 + $0x3f8] sm:$0xff] }
  0xc7   : > { %1227 = vmatprep.subr.mxu1 %v755_v5  ;;  %1151 = vmatpush2.msra.mxu0 %v498_v22  ;;  %v643_v20 = vld [vmem:[%s3934_s1 + $0xc28] sm:$0xff]  ;;  %v642_v2 = vld [vmem:[%s3934_s1 + $0xc20] sm:$0xff]  ;;  %v637_v22 = vld [vmem:[%s3934_s1 + $0xbf8] sm:$0xff] }
  0xc8   : > { %1228 = vmatpush2.msra.mxu1 %v754_v23  ;;  %1152 = vmatprep.subr.mxu0 %v491_v24  ;;  %v3478_v5 = vld [vmem:[%s2646_s23 + $0x8] sm:$0xff]  ;;  %v3485_v23 = vld [vmem:[%s2646_s23] sm:$0xff]  ;;  %v380_v24 = vld [vmem:[%s3934_s1 + $0x3f0] sm:$0xff] }
  0xc9   : > { %1229 = vmatprep.subr.mxu1 %v747_v25  ;;  %1153 = vmatpush2.msra.mxu0 %v490_v26  ;;  %v636_v25 = vld [vmem:[%s3934_s1 + $0xbf0] sm:$0xff]  ;;  %v3495_v26 = vld [vmem:[%s2646_s23 + $0x18] sm:$0xff] }
  0xca   : > { %1230 = vmatpush2.msra.mxu1 %v746_v27  ;;  %1154 = vmatprep.subr.mxu0 %v483_v28  ;;  %v373_v27 = vld [vmem:[%s3934_s1 + $0x3b8] sm:$0xff] }
  0xcb   : > { %1231 = vmatprep.subr.mxu1 %v739_v29  ;;  %1155 = vmatpush2.msra.mxu0 %v482_v30  ;;  %v629_v28 = vld [vmem:[%s3934_s1 + $0xbb8] sm:$0xff]  ;;  %v3505_v29 = vld [vmem:[%s2646_s23 + $0x10] sm:$0xff] }
  0xcc   : > { %1232 = vmatpush2.msra.mxu1 %v738_v31  ;;  %1156 = vmatprep.subr.mxu0 %v475_v32  ;;  %v372_v30 = vld [vmem:[%s3934_s1 + $0x3b0] sm:$0xff]  ;;  %v365_v32 = vld [vmem:[%s3934_s1 + $0x378] sm:$0xff] }
  0xcd   : > { %1233 = vmatprep.subr.mxu1 %v731_v33  ;;  %1157 = vmatpush2.msra.mxu0 %v474_v34  ;;  %v628_v31 = vld [vmem:[%s3934_s1 + $0xbb0] sm:$0xff]  ;;  %v621_v33 = vld [vmem:[%s3934_s1 + $0xb78] sm:$0xff] }
  0xce   : > { %1234 = vmatpush2.msra.mxu1 %v730_v35  ;;  %1158 = vmatprep.subr.mxu0 %v467_v36  ;;  %v364_v34 = vld [vmem:[%s3934_s1 + $0x370] sm:$0xff]  ;;  %v357_v36 = vld [vmem:[%s3934_s1 + $0x338] sm:$0xff] }
  0xcf   : > { %1235 = vmatprep.subr.mxu1 %v723_v37  ;;  %1159 = vmatpush2.msra.mxu0 %v466_v38  ;;  %v620_v35 = vld [vmem:[%s3934_s1 + $0xb70] sm:$0xff]  ;;  %v349_v38 = vld [vmem:[%s3934_s1 + $0x2f8] sm:$0xff] }
  0xd0   : > { %1236 = vmatpush2.msra.mxu1 %v722_v39  ;;  %1160 = vmatprep.subr.mxu0 %v459_v40  ;;  %v612_v37 = vld [vmem:[%s3934_s1 + $0xb30] sm:$0xff]  ;;  %v605_v39 = vld [vmem:[%s3934_s1 + $0xaf8] sm:$0xff] }
  0xd1   : > { %1237 = vmatprep.subr.mxu1 %v715_v41  ;;  %1161 = vmatpush2.msra.mxu0 %v458_v42  ;;  %v604_v40 = vld [vmem:[%s3934_s1 + $0xaf0] sm:$0xff]  ;;  %v341_v41 = vld [vmem:[%s3934_s1 + $0x2b8] sm:$0xff] }
  0xd2   : > { %1238 = vmatpush2.msra.mxu1 %v714_v43  ;;  %1162 = vmatprep.subr.mxu0 %v451_v44  ;;  %v597_v42 = vld [vmem:[%s3934_s1 + $0xab8] sm:$0xff]  ;;  %v596_v43 = vld [vmem:[%s3934_s1 + $0xab0] sm:$0xff] }
  0xd3   : > { %1239 = vmatprep.subr.mxu1 %v707_v45  ;;  %1163 = vmatpush2.msra.mxu0 %v450_v46  ;;  %v333_v44 = vld [vmem:[%s3934_s1 + $0x278] sm:$0xff]  ;;  %v332_v46 = vld [vmem:[%s3934_s1 + $0x270] sm:$0xff] }
  0xd4   : > { %1240 = vmatpush2.msra.mxu1 %v706_v47  ;;  %1164 = vmatprep.subr.mxu0 %v443_v48  ;;  %v589_v45 = vld [vmem:[%s3934_s1 + $0xa78] sm:$0xff]  ;;  %v588_v47 = vld [vmem:[%s3934_s1 + $0xa70] sm:$0xff] }
  0xd5   : > { %1241 = vmatprep.subr.mxu1 %v699_v49  ;;  %1165 = vmatpush2.msra.mxu0 %v442_v50  ;;  %v325_v48 = vld [vmem:[%s3934_s1 + $0x238] sm:$0xff]  ;;  %v324_v50 = vld [vmem:[%s3934_s1 + $0x230] sm:$0xff] }
  0xd6   : > { %1242 = vmatpush2.msra.mxu1 %v698_v51  ;;  %1166 = vmatprep.subr.mxu0 %v435_v52  ;;  %v581_v49 = vld [vmem:[%s3934_s1 + $0xa38] sm:$0xff]  ;;  %v580_v51 = vld [vmem:[%s3934_s1 + $0xa30] sm:$0xff] }
  0xd7   : > { %1243 = vmatprep.subr.mxu1 %v691_v53  ;;  %1167 = vmatpush2.msra.mxu0 %v434_v55  ;;  %v317_v52 = vld [vmem:[%s3934_s1 + $0x1f8] sm:$0xff]  ;;  %v316_v55 = vld [vmem:[%s3934_s1 + $0x1f0] sm:$0xff] }
  0xd8   : > { %1244 = vmatpush2.msra.mxu1 %v690_v56  ;;  %1168 = vmatprep.subr.mxu0 %v427_v58  ;;  %v573_v53 = vld [vmem:[%s3934_s1 + $0x9f8] sm:$0xff]  ;;  %v572_v56 = vld [vmem:[%s3934_s1 + $0x9f0] sm:$0xff] }
  0xd9   : > { %1245 = vmatprep.subr.mxu1 %v683_v59  ;;  %1169 = vmatpush2.msra.mxu0 %v426_v61  ;;  %v309_v58 = vld [vmem:[%s3934_s1 + $0x1b8] sm:$0xff]  ;;  %v308_v61 = vld [vmem:[%s3934_s1 + $0x1b0] sm:$0xff] }
  0xda   : > { %1246 = vmatpush2.msra.mxu1 %v682_v62  ;;  %1170 = vmatprep.subr.mxu0 %v419_v0  ;;  %v565_v59 = vld [vmem:[%s3934_s1 + $0x9b8] sm:$0xff]  ;;  %v564_v62 = vld [vmem:[%s3934_s1 + $0x9b0] sm:$0xff] }
  0xdb   : > { %1247 = vmatprep.subr.mxu1 %v675_v4  ;;  %1171 = vmatpush2.msra.mxu0 %v418_v6  ;;  %v301_v0 = vld [vmem:[%s3934_s1 + $0x178] sm:$0xff]  ;;  %v300_v6 = vld [vmem:[%s3934_s1 + $0x170] sm:$0xff] }
  0xdc   : > { %1248 = vmatpush2.msra.mxu1 %v674_v7  ;;  %1172 = vmatprep.subr.mxu0 %v411_v8  ;;  %v557_v4 = vld [vmem:[%s3934_s1 + $0x978] sm:$0xff]  ;;  %v556_v7 = vld [vmem:[%s3934_s1 + $0x970] sm:$0xff] }
  0xdd   : > { %1249 = vmatprep.subr.mxu1 %v667_v9  ;;  %1173 = vmatpush2.msra.mxu0 %v410_v10  ;;  %v293_v8 = vld [vmem:[%s3934_s1 + $0x138] sm:$0xff]  ;;  %v292_v10 = vld [vmem:[%s3934_s1 + $0x130] sm:$0xff] }
  0xde   : > { %1250 = vmatpush2.msra.mxu1 %v666_v11  ;;  %1174 = vmatprep.subr.mxu0 %v403_v12  ;;  %v549_v9 = vld [vmem:[%s3934_s1 + $0x938] sm:$0xff]  ;;  %v548_v11 = vld [vmem:[%s3934_s1 + $0x930] sm:$0xff] }
  0xdf   : > { %1251 = vmatprep.subr.mxu1 %v659_v13  ;;  %1175 = vmatpush2.msra.mxu0 %v402_v14  ;;  %v285_v12 = vld [vmem:[%s3934_s1 + $0xf8] sm:$0xff]  ;;  %v284_v14 = vld [vmem:[%s3934_s1 + $0xf0] sm:$0xff] }
  0xe0   : > { %1252 = vmatpush2.msra.mxu1 %v658_v15  ;;  %1176 = vmatprep.subr.mxu0 %v395_v16  ;;  %v541_v13 = vld [vmem:[%s3934_s1 + $0x8f8] sm:$0xff]  ;;  %v540_v15 = vld [vmem:[%s3934_s1 + $0x8f0] sm:$0xff] }
  0xe1   : > { %1253 = vmatprep.subr.mxu1 %v651_v17  ;;  %1177 = vmatpush2.msra.mxu0 %v394_v18  ;;  %v277_v16 = vld [vmem:[%s3934_s1 + $0xb8] sm:$0xff]  ;;  %v276_v18 = vld [vmem:[%s3934_s1 + $0xb0] sm:$0xff] }
  0xe2   : > { %1254 = vmatpush2.msra.mxu1 %v650_v19  ;;  %1178 = vmatprep.subr.mxu0 %v387_v63  ;;  %v533_v17 = vld [vmem:[%s3934_s1 + $0x8b8] sm:$0xff]  ;;  %v532_v19 = vld [vmem:[%s3934_s1 + $0x8b0] sm:$0xff] }
  0xe3   : > { %1255 = vmatprep.subr.mxu1 %v643_v20  ;;  %1179 = vmatpush2.msra.mxu0 %v386_v1  ;;  %v269_v63 = vld [vmem:[%s3934_s1 + $0x78] sm:$0xff]  ;;  %v268_v1 = vld [vmem:[%s3934_s1 + $0x70] sm:$0xff] }
  0xe4   : > { %1180 = vmatprep.mubr.f32.mxu0 %v3478_v5  ;;  %1256 = vmatpush2.msra.mxu1 %v642_v2  ;;  %v525_v20 = vld [vmem:[%s3934_s1 + $0x878] sm:$0xff]  ;;  %v524_v2 = vld [vmem:[%s3934_s1 + $0x870] sm:$0xff] }
  0xe5   : > { %1181 = vmatmul.mubr.f32.vlgmr.msra.gmra.mxu0 %v3485_v23  ;;  %1257 = vmatprep.mubr.f32.mxu1 %v3495_v26 }
  0xe6   : > { %1270 = vmatprep.subr.mxu0 %v381_v21  ;;  %1347 = vmatprep.subr.mxu1 %v637_v22  ;;  %v261_v21 = vld [vmem:[%s3934_s1 + $0x38] sm:$0xff] }
  0xe7   : > { %1258 = vmatmul.mubr.f32.vlgmr.msra.gmra.mxu1 %v3505_v29  ;;  %1271 = vmatpush1.msra.mxu0 %v380_v24  ;;  %v517_v22 = vld [vmem:[%s3934_s1 + $0x838] sm:$0xff]  ;;  %v260_v24 = vld [vmem:[%s3934_s1 + $0x30] sm:$0xff] }
  0xe8   : > { %1348 = vmatpush1.msra.mxu1 %v636_v25  ;;  %1272 = vmatprep.subr.mxu0 %v373_v27  ;;  %v516_v25 = vld [vmem:[%s3934_s1 + $0x830] sm:$0xff]  ;;  %v509_v27 = vld [vmem:[%s3934_s1 + $0x7f8] sm:$0xff] }
  0xe9   : > { %1349 = vmatprep.subr.mxu1 %v629_v28  ;;  %1186 = vmatprep.mubr.f32.mxu0 %v3013_v54  ;;  %v613_v54 = vld [vmem:[%s3934_s1 + $0xb38] sm:$0xff] }
  0xea   : > { %1273 = vmatpush1.msra.mxu0 %v372_v30  ;;  %1350 = vmatpush1.msra.mxu1 %v628_v31  ;;  %v765_v28 = vld [vmem:[%s3934_s1 + $0xff8] sm:$0xff]  ;;  %v508_v30 = vld [vmem:[%s3934_s1 + $0x7f0] sm:$0xff] }
  0xeb   : > { %1187 = vmatmul.mubr.f32.gmra.mxu0 %v3022_v57  ;;  %1274 = vmatprep.subr.mxu0 %v365_v32  ;;  %v356_v57 = vld [vmem:[%s3934_s1 + $0x330] sm:$0xff]  ;;  %v501_v32 = vld [vmem:[%s3934_s1 + $0x7b8] sm:$0xff] }
  0xec   : > { %1351 = vmatprep.subr.mxu1 %v621_v33  ;;  %1263 = vmatprep.mubr.f32.mxu1 %v3032_v60  ;;  %v348_v60 = vld [vmem:[%s3934_s1 + $0x2f0] sm:$0xff]  ;;  %v757_v33 = vld [vmem:[%s3934_s1 + $0xfb8] sm:$0xff] }
  0xed   : > { %1275 = vmatpush1.msra.mxu0 %v364_v34  ;;  %1352 = vmatpush1.msra.mxu1 %v620_v35  ;;  %v764_v31 = vld [vmem:[%s3934_s1 + $0xff0] sm:$0xff] }
  0xee   : > { %1276 = vmatprep.subr.mxu0 %v357_v36  ;;  %1264 = vmatmul.mubr.f32.gmra.mxu1 %v3045_v3  ;;  %v340_v3 = vld [vmem:[%s3934_s1 + $0x2b0] sm:$0xff]  ;;  %v493_v36 = vld [vmem:[%s3934_s1 + $0x778] sm:$0xff] }
  0xef   : > { %1353 = vmatprep.subr.mxu1 %v613_v54  ;;  %1277 = vmatpush1.msra.mxu0 %v356_v57  ;;  %v500_v34 = vld [vmem:[%s3934_s1 + $0x7b0] sm:$0xff]  ;;  %v749_v54 = vld [vmem:[%s3934_s1 + $0xf78] sm:$0xff] }
  0xf0   : > { %1354 = vmatpush1.msra.mxu1 %v612_v37  ;;  %1278 = vmatprep.subr.mxu0 %v349_v38  ;;  %v756_v35 = vld [vmem:[%s3934_s1 + $0xfb0] sm:$0xff]  ;;  %v485_v38 = vld [vmem:[%s3934_s1 + $0x738] sm:$0xff] }
  0xf1   : > { %1355 = vmatprep.subr.mxu1 %v605_v39  ;;  %1279 = vmatpush1.msra.mxu0 %v348_v60  ;;  %v492_v57 = vld [vmem:[%s3934_s1 + $0x770] sm:$0xff]  ;;  %v741_v39 = vld [vmem:[%s3934_s1 + $0xf38] sm:$0xff] }
  0xf2   : > { %1356 = vmatpush1.msra.mxu1 %v604_v40  ;;  %1280 = vmatprep.subr.mxu0 %v341_v41  ;;  %v748_v37 = vld [vmem:[%s3934_s1 + $0xf70] sm:$0xff]  ;;  %v477_v41 = vld [vmem:[%s3934_s1 + $0x6f8] sm:$0xff] }
  0xf3   : > { %1357 = vmatprep.subr.mxu1 %v597_v42  ;;  %1281 = vmatpush1.msra.mxu0 %v340_v3  ;;  %v484_v60 = vld [vmem:[%s3934_s1 + $0x730] sm:$0xff]  ;;  %v733_v42 = vld [vmem:[%s3934_s1 + $0xef8] sm:$0xff] }
  0xf4   : > { %1358 = vmatpush1.msra.mxu1 %v596_v43  ;;  %1282 = vmatprep.subr.mxu0 %v333_v44  ;;  %v740_v40 = vld [vmem:[%s3934_s1 + $0xf30] sm:$0xff]  ;;  %v469_v44 = vld [vmem:[%s3934_s1 + $0x6b8] sm:$0xff] }
  0xf5   : > { %1359 = vmatprep.subr.mxu1 %v589_v45  ;;  %1283 = vmatpush1.msra.mxu0 %v332_v46  ;;  %v476_v3 = vld [vmem:[%s3934_s1 + $0x6f0] sm:$0xff]  ;;  %v725_v45 = vld [vmem:[%s3934_s1 + $0xeb8] sm:$0xff] }
  0xf6   : > { %1360 = vmatpush1.msra.mxu1 %v588_v47  ;;  %1284 = vmatprep.subr.mxu0 %v325_v48  ;;  %v732_v43 = vld [vmem:[%s3934_s1 + $0xef0] sm:$0xff]  ;;  %v461_v48 = vld [vmem:[%s3934_s1 + $0x678] sm:$0xff] }
  0xf7   : > { %1361 = vmatprep.subr.mxu1 %v581_v49  ;;  %1285 = vmatpush1.msra.mxu0 %v324_v50  ;;  %v468_v46 = vld [vmem:[%s3934_s1 + $0x6b0] sm:$0xff]  ;;  %v717_v49 = vld [vmem:[%s3934_s1 + $0xe78] sm:$0xff] }
  0xf8   : > { %1362 = vmatpush1.msra.mxu1 %v580_v51  ;;  %1286 = vmatprep.subr.mxu0 %v317_v52  ;;  %v724_v47 = vld [vmem:[%s3934_s1 + $0xeb0] sm:$0xff]  ;;  %v453_v52 = vld [vmem:[%s3934_s1 + $0x638] sm:$0xff] }
  0xf9   : > { %1363 = vmatprep.subr.mxu1 %v573_v53  ;;  %1287 = vmatpush1.msra.mxu0 %v316_v55  ;;  %v460_v50 = vld [vmem:[%s3934_s1 + $0x670] sm:$0xff]  ;;  %v709_v53 = vld [vmem:[%s3934_s1 + $0xe38] sm:$0xff]  ;;  %v768_v55 = vlaneseq }
  0xfa   : > { %1364 = vmatpush1.msra.mxu1 %v572_v56  ;;  %1288 = vmatprep.subr.mxu0 %v309_v58  ;;  %v716_v51 = vld [vmem:[%s3934_s1 + $0xe70] sm:$0xff] }
  0xfb   : > { %1365 = vmatprep.subr.mxu1 %v565_v59  ;;  %1289 = vmatpush1.msra.mxu0 %v308_v61  ;;  %v452_v56 = vld [vmem:[%s3934_s1 + $0x630] sm:$0xff]  ;;  %v445_v59 = vld [vmem:[%s3934_s1 + $0x5f8] sm:$0xff] }
  0xfc   : > { %1366 = vmatpush1.msra.mxu1 %v564_v62  ;;  %1290 = vmatprep.subr.mxu0 %v301_v0  ;;  %v708_v58 = vld [vmem:[%s3934_s1 + $0xe30] sm:$0xff]  ;;  %v701_v61 = vld [vmem:[%s3934_s1 + $0xdf8] sm:$0xff] }
  0xfd   : > { %1367 = vmatprep.subr.mxu1 %v557_v4  ;;  %1291 = vmatpush1.msra.mxu0 %v300_v6  ;;  %v444_v62 = vld [vmem:[%s3934_s1 + $0x5f0] sm:$0xff]  ;;  %v437_v4 = vld [vmem:[%s3934_s1 + $0x5b8] sm:$0xff] }
  0xfe   : > { %1368 = vmatpush1.msra.mxu1 %v556_v7  ;;  %1292 = vmatprep.subr.mxu0 %v293_v8  ;;  %v700_v0 = vld [vmem:[%s3934_s1 + $0xdf0] sm:$0xff]  ;;  %v693_v6 = vld [vmem:[%s3934_s1 + $0xdb8] sm:$0xff]  ;;  %v3800_v7 = vshrl.u32 %v768_v55, 7  ;;  %v1501_v55 = vld [vmem:[#allocation2 + $0x1e8] sm:$0xff] }
  0xff   : > { %1369 = vmatprep.subr.mxu1 %v549_v9  ;;  %1293 = vmatpush1.msra.mxu0 %v292_v10  ;;  %v436_v8 = vld [vmem:[%s3934_s1 + $0x5b0] sm:$0xff]  ;;  %v429_v10 = vld [vmem:[%s3934_s1 + $0x578] sm:$0xff] }
 0x100   : > { %1370 = vmatpush1.msra.mxu1 %v548_v11  ;;  %1294 = vmatprep.subr.mxu0 %v285_v12  ;;  %v692_v9 = vld [vmem:[%s3934_s1 + $0xdb0] sm:$0xff]  ;;  %v685_v11 = vld [vmem:[%s3934_s1 + $0xd78] sm:$0xff] }
 0x101   : > { %1371 = vmatprep.subr.mxu1 %v541_v13  ;;  %1295 = vmatpush1.msra.mxu0 %v284_v14  ;;  %v428_v12 = vld [vmem:[%s3934_s1 + $0x570] sm:$0xff]  ;;  %v421_v14 = vld [vmem:[%s3934_s1 + $0x538] sm:$0xff] }
 0x102   : > { %1372 = vmatpush1.msra.mxu1 %v540_v15  ;;  %1296 = vmatprep.subr.mxu0 %v277_v16  ;;  %v684_v13 = vld [vmem:[%s3934_s1 + $0xd70] sm:$0xff]  ;;  %v677_v15 = vld [vmem:[%s3934_s1 + $0xd38] sm:$0xff]  ;;  %v774_v16 = vsub.s32 1, %v3800_v7 }
 0x103   : > { %1373 = vmatprep.subr.mxu1 %v533_v17  ;;  %1297 = vmatpush1.msra.mxu0 %v276_v18  ;;  %v420_v17 = vld [vmem:[%s3934_s1 + $0x530] sm:$0xff] }
 0x104   : > { %1374 = vmatpush1.msra.mxu1 %v532_v19  ;;  %1298 = vmatprep.subr.mxu0 %v269_v63  ;;  %v676_v18 = vld [vmem:[%s3934_s1 + $0xd30] sm:$0xff]  ;;  %v3836_v19 = vld [vmem:[%s3935_s2] sm:$0xff] }
 0x105   : > { %1375 = vmatprep.subr.mxu1 %v525_v20  ;;  %1299 = vmatpush1.msra.mxu0 %v268_v1  ;;  %v413_v20 = vld [vmem:[%s3934_s1 + $0x4f8] sm:$0xff] }
 0x106   : > { %1376 = vmatpush1.msra.mxu1 %v524_v2  ;;  %1300 = vmatprep.subr.mxu0 %v261_v21  ;;  %v669_v1 = vld [vmem:[%s3934_s1 + $0xcf8] sm:$0xff]  ;;  %v412_v2 = vld [vmem:[%s3934_s1 + $0x4f0] sm:$0xff] }
 0x107   : > { %1377 = vmatprep.subr.mxu1 %v517_v22  ;;  %1301 = vmatpush1.msra.mxu0 %v260_v24  ;;  %v668_v21 = vld [vmem:[%s3934_s1 + $0xcf0] sm:$0xff]  ;;  %v405_v22 = vld [vmem:[%s3934_s1 + $0x4b8] sm:$0xff] }
 0x108   : > { %1378 = vmatpush1.msra.mxu1 %v516_v25  ;;  %1302 = vmatprep.subr.mxu0 %v509_v27  ;;  %v661_v24 = vld [vmem:[%s3934_s1 + $0xcb8] sm:$0xff]  ;;  %v3859_v25 = vrot.slane %v3836_v19, %v774_v16  ;;  %v404_v27 = vld [vmem:[%s3934_s1 + $0x4b0] sm:$0xff]  ;;  %v1497_v16 = vld [vmem:[#allocation2 + $0x1c8] sm:$0xff] }
 0x109   : > { %1379 = vmatprep.subr.mxu1 %v765_v28  ;;  %1303 = vmatpush2.msra.mxu0 %v508_v30  ;;  %v660_v28 = vld [vmem:[%s3934_s1 + $0xcb0] sm:$0xff] }
 0x10a   : > { %1380 = vmatpush2.msra.mxu1 %v764_v31  ;;  %1304 = vmatprep.subr.mxu0 %v501_v32  ;;  %v397_v32 = vld [vmem:[%s3934_s1 + $0x478] sm:$0xff] }
 0x10b   : > { %1381 = vmatprep.subr.mxu1 %v757_v33  ;;  %1305 = vmatpush2.msra.mxu0 %v500_v34  ;;  %v653_v33 = vld [vmem:[%s3934_s1 + $0xc78] sm:$0xff]  ;;  %v396_v34 = vld [vmem:[%s3934_s1 + $0x470] sm:$0xff] }
 0x10c   : > { %1382 = vmatpush2.msra.mxu1 %v756_v35  ;;  %1306 = vmatprep.subr.mxu0 %v493_v36  ;;  %v652_v35 = vld [vmem:[%s3934_s1 + $0xc70] sm:$0xff]  ;;  %v389_v36 = vld [vmem:[%s3934_s1 + $0x438] sm:$0xff] }
 0x10d   : > { %1383 = vmatprep.subr.mxu1 %v749_v54  ;;  %1307 = vmatpush2.msra.mxu0 %v492_v57  ;;  %v645_v54 = vld [vmem:[%s3934_s1 + $0xc38] sm:$0xff] }
 0x10e   : > { %1384 = vmatpush2.msra.mxu1 %v748_v37  ;;  %1308 = vmatprep.subr.mxu0 %v485_v38  ;;  %v388_v37 = vld [vmem:[%s3934_s1 + $0x430] sm:$0xff] }
 0x10f   : > { %1385 = vmatprep.subr.mxu1 %v741_v39  ;;  %1309 = vmatpush2.msra.mxu0 %v484_v60  ;;  %v644_v39 = vld [vmem:[%s3934_s1 + $0xc30] sm:$0xff]  ;;  %v1471_v60 = vld [vmem:[#allocation2 + $0xf8] sm:$0xff] }
 0x110   : > { %1386 = vmatpush2.msra.mxu1 %v740_v40  ;;  %1310 = vmatprep.subr.mxu0 %v477_v41  ;;  %v1455_v41 = vld [vmem:[#allocation2 + $0x78] sm:$0xff] }
 0x111   : > { %1387 = vmatprep.subr.mxu1 %v733_v42  ;;  %1311 = vmatpush2.msra.mxu0 %v476_v3  ;;  %v1470_v42 = vld [vmem:[#allocation2 + $0xf0] sm:$0xff]  ;;  %v1503_v3 = vld [vmem:[#allocation2 + $0x1f8] sm:$0xff] }
 0x112   : > { %1388 = vmatpush2.msra.mxu1 %v732_v43  ;;  %1312 = vmatprep.subr.mxu0 %v469_v44  ;;  %v2160_v43 = vld [vmem:[%s2646_s23 + $0x28] sm:$0xff]  ;;  %v1454_v44 = vld [vmem:[#allocation2 + $0x70] sm:$0xff] }
 0x113   : > { %1389 = vmatprep.subr.mxu1 %v725_v45  ;;  %1313 = vmatpush2.msra.mxu0 %v468_v46  ;;  %v2161_v45 = vld [vmem:[%s2646_s23 + $0x38] sm:$0xff]  ;;  %v1469_v46 = vld [vmem:[#allocation2 + $0xe8] sm:$0xff] }
 0x114   : > { %1390 = vmatpush2.msra.mxu1 %v724_v47  ;;  %1314 = vmatprep.subr.mxu0 %v461_v48  ;;  %v1487_v47 = vld [vmem:[#allocation2 + $0x178] sm:$0xff]  ;;  %v2163_v48 = vld [vmem:[%s2646_s23 + $0x20] sm:$0xff] }
 0x115   : > { %1391 = vmatprep.subr.mxu1 %v717_v49  ;;  %1315 = vmatpush2.msra.mxu0 %v460_v50  ;;  %v1452_v49 = vld [vmem:[#allocation2 + $0x60] sm:$0xff]  ;;  %v1502_v50 = vld [vmem:[#allocation2 + $0x1f0] sm:$0xff] }
 0x116   : > { %1392 = vmatpush2.msra.mxu1 %v716_v51  ;;  %1316 = vmatprep.subr.mxu0 %v453_v52  ;;  %v1467_v51 = vld [vmem:[#allocation2 + $0xd8] sm:$0xff]  ;;  %v1486_v52 = vld [vmem:[#allocation2 + $0x170] sm:$0xff] }
 0x117   : > { %1393 = vmatprep.subr.mxu1 %v709_v53  ;;  %1317 = vmatpush2.msra.mxu0 %v452_v56  ;;  %v1451_v53 = vld [vmem:[#allocation2 + $0x58] sm:$0xff]  ;;  %v1466_v56 = vld [vmem:[#allocation2 + $0xd0] sm:$0xff] }
 0x118   : > { %1394 = vmatpush2.msra.mxu1 %v708_v58  ;;  %1318 = vmatprep.subr.mxu0 %v445_v59  ;;  %v1485_v58 = vld [vmem:[#allocation2 + $0x168] sm:$0xff]  ;;  %v1450_v59 = vld [vmem:[#allocation2 + $0x50] sm:$0xff] }
 0x119   : > { %1395 = vmatprep.subr.mxu1 %v701_v61  ;;  %1319 = vmatpush2.msra.mxu0 %v444_v62  ;;  %v1500_v61 = vld [vmem:[#allocation2 + $0x1e0] sm:$0xff]  ;;  %v1465_v62 = vld [vmem:[#allocation2 + $0xc8] sm:$0xff] }
 0x11a   : > { %1396 = vmatpush2.msra.mxu1 %v700_v0  ;;  %1320 = vmatprep.subr.mxu0 %v437_v4  ;;  %v1484_v0 = vld [vmem:[#allocation2 + $0x160] sm:$0xff]  ;;  %v1449_v4 = vld [vmem:[#allocation2 + $0x48] sm:$0xff] }
 0x11b   : > { %1397 = vmatprep.subr.mxu1 %v693_v6  ;;  %1321 = vmatpush2.msra.mxu0 %v436_v8  ;;  %v1499_v6 = vld [vmem:[#allocation2 + $0x1d8] sm:$0xff]  ;;  %v1464_v8 = vld [vmem:[#allocation2 + $0xc0] sm:$0xff] }
 0x11c   : > { %1398 = vmatpush2.msra.mxu1 %v692_v9  ;;  %1322 = vmatprep.subr.mxu0 %v429_v10  ;;  %v1483_v9 = vld [vmem:[#allocation2 + $0x158] sm:$0xff]  ;;  %v1448_v10 = vld [vmem:[#allocation2 + $0x40] sm:$0xff] }
 0x11d   : > { %1399 = vmatprep.subr.mxu1 %v685_v11  ;;  %v3838_v63 = vpop.f32.mrf.mxu0  ;;  %1323 = vmatpush2.msra.mxu0 %v428_v12  ;;  %v1498_v11 = vld [vmem:[#allocation2 + $0x1d0] sm:$0xff]  ;;  %v1463_v12 = vld [vmem:[#allocation2 + $0xb8] sm:$0xff] }
 0x11e   : > { %1400 = vmatpush2.msra.mxu1 %v684_v13  ;;  %1324 = vmatprep.subr.mxu0 %v421_v14  ;;  %v1482_v13 = vld [vmem:[#allocation2 + $0x150] sm:$0xff]  ;;  %v770_v14 = vsub.s32 0, %v3800_v7 }
 0x11f   : > { %1401 = vmatprep.subr.mxu1 %v677_v15  ;;  %1325 = vmatpush2.msra.mxu0 %v420_v17  ;;  %v3867_v30 = vpop.f32.mrf.mxu1  ;;  %v876_v31 = vpop.f32.mrf.mxu0  ;;  %v1447_v15 = vld [vmem:[#allocation2 + $0x38] sm:$0xff]  ;;  %v1462_v17 = vld [vmem:[#allocation2 + $0xb0] sm:$0xff] }
 0x120   : > { %1402 = vmatpush2.msra.mxu1 %v676_v18  ;;  %1326 = vmatprep.subr.mxu0 %v413_v20  ;;  %v877_v57 = vadd.f32 %v876_v31, %v3859_v25  ;;  %v1481_v18 = vld [vmem:[#allocation2 + $0x148] sm:$0xff]  ;;  %v1446_v20 = vld [vmem:[#allocation2 + $0x30] sm:$0xff]  ;;  %v1479_v31 = vld [vmem:[#allocation2 + $0x138] sm:$0xff] }
 0x121   : > { %1403 = vmatprep.subr.mxu1 %v669_v1  ;;  %1327 = vmatpush2.msra.mxu0 %v412_v2  ;;  %v953_v38 = vpop.f32.mrf.mxu1  ;;  %v1496_v1 = vld [vmem:[#allocation2 + $0x1c0] sm:$0xff]  ;;  %v1461_v2 = vld [vmem:[#allocation2 + $0xa8] sm:$0xff] }
 0x122   : > { %1404 = vmatpush2.msra.mxu1 %v668_v21  ;;  %1328 = vmatprep.subr.mxu0 %v405_v22  ;;  %v954_v40 = vadd.f32 %v953_v38, %v877_v57  ;;  %v1480_v21 = vld [vmem:[#allocation2 + $0x140] sm:$0xff]  ;;  %v3904_v22 = vrot.slane %v3836_v19, %v770_v14  ;;  %v1493_v57 = vld [vmem:[#allocation2 + $0x1a8] sm:$0xff] }
 0x123   : > { %1405 = vmatprep.subr.mxu1 %v661_v24  ;;  %1329 = vmatpush2.msra.mxu0 %v404_v27  ;;  %v1445_v24 = vld [vmem:[#allocation2 + $0x28] sm:$0xff]  ;;  %v1495_v27 = vld [vmem:[#allocation2 + $0x1b8] sm:$0xff] }
 0x124   : > { %1406 = vmatpush2.msra.mxu1 %v660_v28  ;;  %1330 = vmatprep.subr.mxu0 %v397_v32  ;;  %v1460_v28 = vld [vmem:[#allocation2 + $0xa0] sm:$0xff]  ;;  %v1477_v38 = vld [vmem:[#allocation2 + $0x128] sm:$0xff] }
 0x125   : > { %1407 = vmatprep.subr.mxu1 %v653_v33  ;;  %1331 = vmatpush2.msra.mxu0 %v396_v34  ;;  %v1444_v32 = vld [vmem:[#allocation2 + $0x20] sm:$0xff]  ;;  %v1494_v33 = vld [vmem:[#allocation2 + $0x1b0] sm:$0xff]  ;;  %v1459_v34 = vld [vmem:[#allocation2 + $0x98] sm:$0xff] }
 0x126   : > { %1408 = vmatpush2.msra.mxu1 %v652_v35  ;;  %1332 = vmatprep.subr.mxu0 %v389_v36  ;;  %v1478_v35 = vld [vmem:[#allocation2 + $0x130] sm:$0xff]  ;;  %v875_v36 = vadd.f32 %v3838_v63, %v3904_v22  ;;  %v1441_v63 = vld [vmem:[#allocation2 + $0x8] sm:$0xff] }
 0x127   : > { %1409 = vmatprep.subr.mxu1 %v645_v54  ;;  %1333 = vmatpush2.msra.mxu0 %v388_v37  ;;  %v1443_v54 = vld [vmem:[#allocation2 + $0x18] sm:$0xff]  ;;  %v1458_v37 = vld [vmem:[#allocation2 + $0x90] sm:$0xff] }
 0x128   : > { %1334 = vmatprep.mubr.f32.mxu0 %v3478_v5  ;;  %1410 = vmatpush2.msra.mxu1 %v644_v39  ;;  %v1425_v5 = vmax.f32 %v954_v40, 0.0  ;;  %v1442_v39 = vld [vmem:[#allocation2 + $0x10] sm:$0xff]  ;;  %v1457_v40 = vld [vmem:[#allocation2 + $0x88] sm:$0xff] }
 0x129   : > { %1411 = vmatprep.mubr.f32.mxu1 %v3495_v26  ;;  %1335 = vmatmul.mubr.f32.vlgmr.msra.gmra.mxu0 %v3485_v23  ;;  %v1453_v26 = vld [vmem:[#allocation2 + $0x68] sm:$0xff]  ;;  %v2162_v23 = vld [vmem:[%s2646_s23 + $0x30] sm:$0xff] }
 0x12a   : > { %1412 = vmatmul.mubr.f32.vlgmr.msra.gmra.mxu1 %v3505_v29  ;;  %1975 = vmatprep.subr.mxu0 %v1471_v60  ;;  %v1468_v29 = vld [vmem:[#allocation2 + $0xe0] sm:$0xff] }
 0x12b   : > { %1340 = vmatprep.mubr.f32.mxu0 %v2160_v43  ;;  %1976 = vmatpush3.msra.mxu0 %v1455_v41  ;;  %v1492_v60 = vld [vmem:[#allocation2 + $0x1a0] sm:$0xff] }
 0x12c   : > { %1417 = vmatprep.mubr.f32.mxu1 %v2161_v45  ;;  %1977 = vmatprep.subr.mxu0 %v1470_v42  ;;  %v1476_v41 = vld [vmem:[#allocation2 + $0x120] sm:$0xff]  ;;  %v952_v42 = vadd.f32 %v3867_v30, %v875_v36  ;;  %v1490_v45 = vld [vmem:[#allocation2 + $0x190] sm:$0xff]  ;;  %v1535_v30 = vld [vmem:[#allocation2 + $0x2f8] sm:$0xff] }
 0x12d   : > { %2013 = vmatprep.subr.mxu1 %v1503_v3  ;;  %1978 = vmatpush3.msra.mxu0 %v1454_v44  ;;  %v1491_v3 = vld [vmem:[#allocation2 + $0x198] sm:$0xff]  ;;  %v1456_v43 = vld [vmem:[#allocation2 + $0x80] sm:$0xff] }
 0x12e   : > { %1418 = vmatmul.mubr.f32.gmra.mxu1 %v2162_v23  ;;  %1341 = vmatmul.mubr.f32.gmra.mxu0 %v2163_v48  ;;  %v1475_v44 = vld [vmem:[#allocation2 + $0x118] sm:$0xff]  ;;  %v1489_v23 = vld [vmem:[#allocation2 + $0x188] sm:$0xff]  ;;  %v1488_v48 = vld [vmem:[#allocation2 + $0x180] sm:$0xff] }
 0x12f   : > { %1979 = vmatprep.subr.mxu0 %v1469_v46  ;;  %1639 = vmatprep.mubr.f32.mxu0 %v1425_v5  ;;  %v1440_v5 = vld [vmem:[#allocation2] sm:$0xff]  ;;  %v1474_v46 = vld [vmem:[#allocation2 + $0x110] sm:$0xff] }
 0x130   : > { %1980 = vmatpush3.msra.mxu0 %v1453_v26  ;;  %2014 = vmatpush3.msra.mxu1 %v1487_v47  ;;  %v1424_v26 = vmax.f32 %v952_v42, 0.0  ;;  %v1519_v47 = vld [vmem:[#allocation2 + $0x278] sm:$0xff]  ;;  %v1506_v42 = vld [vmem:[#allocation2 + $0x210] sm:$0xff] }
 0x131   : > { %1981 = vmatprep.subr.mxu0 %v1468_v29  ;;  %2015 = vmatprep.subr.mxu1 %v1502_v50  ;;  %v1473_v29 = vld [vmem:[#allocation2 + $0x108] sm:$0xff]  ;;  %v1472_v50 = vld [vmem:[#allocation2 + $0x100] sm:$0xff] }
 0x132   : > { %1982 = vmatpush3.msra.mxu0 %v1452_v49  ;;  %2016 = vmatpush3.msra.mxu1 %v1486_v52  ;;  %v1534_v49 = vld [vmem:[#allocation2 + $0x2f0] sm:$0xff]  ;;  %v1533_v52 = vld [vmem:[#allocation2 + $0x2e8] sm:$0xff] }
 0x133   : > { %1983 = vmatprep.subr.mxu0 %v1467_v51  ;;  %2017 = vmatprep.subr.mxu1 %v1501_v55  ;;  %v1518_v51 = vld [vmem:[#allocation2 + $0x270] sm:$0xff]  ;;  %v1517_v55 = vld [vmem:[#allocation2 + $0x268] sm:$0xff] }
 0x134   : > { %1984 = vmatpush3.msra.mxu0 %v1451_v53  ;;  %2018 = vmatpush3.msra.mxu1 %v1485_v58  ;;  %v1567_v53 = vld [vmem:[#allocation2 + $0x3f8] sm:$0xff]  ;;  %v1516_v58 = vld [vmem:[#allocation2 + $0x260] sm:$0xff] }
 0x135   : > { %1985 = vmatprep.subr.mxu0 %v1466_v56  ;;  %2019 = vmatprep.subr.mxu1 %v1500_v61  ;;  %v1532_v56 = vld [vmem:[#allocation2 + $0x2e0] sm:$0xff]  ;;  %v1515_v61 = vld [vmem:[#allocation2 + $0x258] sm:$0xff] }
 0x136   : > { %1986 = vmatpush3.msra.mxu0 %v1450_v59  ;;  %2020 = vmatpush3.msra.mxu1 %v1484_v0  ;;  %v1531_v59 = vld [vmem:[#allocation2 + $0x2d8] sm:$0xff]  ;;  %v1514_v0 = vld [vmem:[#allocation2 + $0x250] sm:$0xff] }
 0x137   : > { %1987 = vmatprep.subr.mxu0 %v1465_v62  ;;  %2021 = vmatprep.subr.mxu1 %v1499_v6  ;;  %v1530_v62 = vld [vmem:[#allocation2 + $0x2d0] sm:$0xff]  ;;  %v1513_v6 = vld [vmem:[#allocation2 + $0x248] sm:$0xff] }
 0x138   : > { %1988 = vmatpush3.msra.mxu0 %v1449_v4  ;;  %2022 = vmatpush3.msra.mxu1 %v1483_v9  ;;  %v1529_v4 = vld [vmem:[#allocation2 + $0x2c8] sm:$0xff]  ;;  %v1528_v9 = vld [vmem:[#allocation2 + $0x2c0] sm:$0xff] }
 0x139   : > { %1989 = vmatprep.subr.mxu0 %v1464_v8  ;;  %2023 = vmatprep.subr.mxu1 %v1498_v11  ;;  %v1512_v11 = vld [vmem:[#allocation2 + $0x240] sm:$0xff] }
 0x13a   : > { %1990 = vmatpush3.msra.mxu0 %v1448_v10  ;;  %2024 = vmatpush3.msra.mxu1 %v1482_v13  ;;  %v1527_v13 = vld [vmem:[#allocation2 + $0x2b8] sm:$0xff] }
 0x13b   : > { %1991 = vmatprep.subr.mxu0 %v1463_v12  ;;  %2025 = vmatprep.subr.mxu1 %v1497_v16  ;;  %v1511_v16 = vld [vmem:[#allocation2 + $0x238] sm:$0xff] }
 0x13c   : > { %1992 = vmatpush3.msra.mxu0 %v1447_v15  ;;  %2026 = vmatpush3.msra.mxu1 %v1481_v18  ;;  %v778_v15 = vsub.s32 2, %v3800_v7  ;;  %v1526_v18 = vld [vmem:[#allocation2 + $0x2b0] sm:$0xff] }
 0x13d   : > { %1993 = vmatprep.subr.mxu0 %v1462_v17  ;;  %2027 = vmatprep.subr.mxu1 %v1496_v1  ;;  %v782_v1 = vsub.s32 3, %v3800_v7 }
 0x13e   : > { %1994 = vmatpush3.msra.mxu0 %v1446_v20  ;;  %2028 = vmatpush3.msra.mxu1 %v1480_v21 }
 0x13f   : > { %1995 = vmatprep.subr.mxu0 %v1461_v2  ;;  %2029 = vmatprep.subr.mxu1 %v1495_v27  ;;  %v1510_v2 = vld [vmem:[#allocation2 + $0x230] sm:$0xff]  ;;  %v779_v27 = vrot.slane %v3836_v19, %v778_v15 }
 0x140   : > { %1996 = vmatpush3.msra.mxu0 %v1445_v24  ;;  %2030 = vmatpush3.msra.mxu1 %v1479_v31  ;;  %v1524_v31 = vld [vmem:[#allocation2 + $0x2a0] sm:$0xff]  ;;  %v1558_v15 = vld [vmem:[#allocation2 + $0x3b0] sm:$0xff] }
 0x141   : > { %1997 = vmatprep.subr.mxu0 %v1460_v28  ;;  %2031 = vmatprep.subr.mxu1 %v1494_v33  ;;  %v783_v33 = vrot.slane %v3836_v19, %v782_v1  ;;  %v1540_v1 = vld [vmem:[#allocation2 + $0x320] sm:$0xff] }
 0x142   : > { %1998 = vmatpush3.msra.mxu0 %v1444_v32  ;;  %2032 = vmatpush3.msra.mxu1 %v1478_v35  ;;  %v1508_v35 = vld [vmem:[#allocation2 + $0x220] sm:$0xff] }
 0x143   : > { %1999 = vmatprep.subr.mxu0 %v1459_v34  ;;  %2033 = vmatprep.subr.mxu1 %v1493_v57 }
 0x144   : > { %2000 = vmatpush3.msra.mxu0 %v1443_v54  ;;  %2034 = vmatpush3.msra.mxu1 %v1477_v38  ;;  %v1523_v54 = vld [vmem:[#allocation2 + $0x298] sm:$0xff] }
 0x145   : > { %2001 = vmatprep.subr.mxu0 %v1458_v37  ;;  %2035 = vmatprep.subr.mxu1 %v1492_v60  ;;  %v1507_v38 = vld [vmem:[#allocation2 + $0x218] sm:$0xff]  ;;  %v1522_v60 = vld [vmem:[#allocation2 + $0x290] sm:$0xff] }
 0x146   : > { %2002 = vmatpush3.msra.mxu0 %v1442_v39  ;;  %2036 = vmatpush3.msra.mxu1 %v1476_v41 }
 0x147   : > { %2003 = vmatprep.subr.mxu0 %v1457_v40  ;;  %2037 = vmatprep.subr.mxu1 %v1491_v3  ;;  %v1521_v3 = vld [vmem:[#allocation2 + $0x288] sm:$0xff] }
 0x148   : > { %2004 = vmatpush3.msra.mxu0 %v1441_v63  ;;  %2038 = vmatpush3.msra.mxu1 %v1475_v44  ;;  %v1505_v44 = vld [vmem:[#allocation2 + $0x208] sm:$0xff] }
 0x149   : > { %2005 = vmatprep.subr.mxu0 %v1456_v43  ;;  %2039 = vmatprep.subr.mxu1 %v1490_v45 }
 0x14a   : > { %2006 = vmatpush3.msra.mxu0 %v1440_v5  ;;  %2040 = vmatpush3.msra.mxu1 %v1474_v46  ;;  %v1520_v46 = vld [vmem:[#allocation2 + $0x280] sm:$0xff] }
 0x14b   : > { %1640 = vmatmul.mubr.f32.vlgmr.msra.gmra.mxu0 %v1424_v26  ;;  %2041 = vmatprep.subr.mxu1 %v1489_v23 }
 0x14c   : > { %2051 = vmatprep.subr.mxu0 %v1535_v30  ;;  %2042 = vmatpush3.msra.mxu1 %v1473_v29  ;;  %v1504_v30 = vld [vmem:[#allocation2 + $0x200] sm:$0xff]  ;;  %v1551_v29 = vld [vmem:[#allocation2 + $0x378] sm:$0xff] }
 0x14d   : > { %2052 = vmatpush3.msra.mxu0 %v1519_v47  ;;  %2043 = vmatprep.subr.mxu1 %v1488_v48  ;;  %v1566_v48 = vld [vmem:[#allocation2 + $0x3f0] sm:$0xff] }
 0x14e   : > { %2053 = vmatprep.subr.mxu0 %v1534_v49  ;;  %2044 = vmatpush3.msra.mxu1 %v1472_v50  ;;  %v1550_v50 = vld [vmem:[#allocation2 + $0x370] sm:$0xff] }
 0x14f   : > { %2054 = vmatpush3.msra.mxu0 %v1518_v51  ;;  %2089 = vmatprep.subr.mxu1 %v1567_v53 }
 0x150   : > { %2055 = vmatprep.subr.mxu0 %v1533_v52  ;;  %v1565_v52 = vld [vmem:[#allocation2 + $0x3e8] sm:$0xff] }
 0x151   : > { %2056 = vmatpush3.msra.mxu0 %v1517_v55  ;;  %v1549_v55 = vld [vmem:[#allocation2 + $0x368] sm:$0xff] }
 0x152   : > { %2057 = vmatprep.subr.mxu0 %v1532_v56 }
 0x153   : > { %2058 = vmatpush3.msra.mxu0 %v1516_v58  ;;  %v1564_v58 = vld [vmem:[#allocation2 + $0x3e0] sm:$0xff] }
 0x154   : > { %2059 = vmatprep.subr.mxu0 %v1531_v59 }
 0x155   : > { %2060 = vmatpush3.msra.mxu0 %v1515_v61  ;;  %v1548_v61 = vld [vmem:[#allocation2 + $0x360] sm:$0xff] }
 0x156   : > { %2061 = vmatprep.subr.mxu0 %v1530_v62 }
 0x157   : > { %v880_v8 = vpop.f32.mrf.mxu0  ;;  %2062 = vmatpush3.msra.mxu0 %v1514_v0  ;;  %v1563_v0 = vld [vmem:[#allocation2 + $0x3d8] sm:$0xff] }
 0x158   : > { %v881_v10 = vadd.f32 %v880_v8, %v3904_v22  ;;  %2063 = vmatprep.subr.mxu0 %v1529_v4  ;;  %v1525_v22 = vld [vmem:[#allocation2 + $0x2a8] sm:$0xff]  ;;  %v1547_v4 = vld [vmem:[#allocation2 + $0x358] sm:$0xff]  ;;  %v1546_v8 = vld [vmem:[#allocation2 + $0x350] sm:$0xff] }
 0x159   : > { %v882_v12 = vpop.f32.mrf.mxu0  ;;  %2064 = vmatpush3.msra.mxu0 %v1513_v6  ;;  %v1562_v6 = vld [vmem:[#allocation2 + $0x3d0] sm:$0xff] }
 0x15a   : > { %v883_v14 = vadd.f32 %v882_v12, %v3859_v25  ;;  %2065 = vmatprep.subr.mxu0 %v1528_v9  ;;  %v957_v17 = vpop.f32.mrf.mxu1  ;;  %v1509_v25 = vld [vmem:[#allocation2 + $0x228] sm:$0xff]  ;;  %v1544_v12 = vld [vmem:[#allocation2 + $0x340] sm:$0xff] }
 0x15b   : > { %2066 = vmatpush3.msra.mxu0 %v1512_v11  ;;  %v958_v20 = vadd.f32 %v957_v17, %v881_v10  ;;  %v1561_v9 = vld [vmem:[#allocation2 + $0x3c8] sm:$0xff]  ;;  %v1560_v11 = vld [vmem:[#allocation2 + $0x3c0] sm:$0xff] }
 0x15c   : > { %2067 = vmatprep.subr.mxu0 %v1527_v13  ;;  %v959_v21 = vpop.f32.mrf.mxu1  ;;  %v1545_v10 = vld [vmem:[#allocation2 + $0x348] sm:$0xff]  ;;  %v1559_v13 = vld [vmem:[#allocation2 + $0x3b8] sm:$0xff] }
 0x15d   : > { %2068 = vmatpush3.msra.mxu0 %v1511_v16  ;;  %v960_v24 = vadd.f32 %v959_v21, %v883_v14  ;;  %v1432_v28 = vmax.f32 %v958_v20, 0.0  ;;  %v1543_v14 = vld [vmem:[#allocation2 + $0x338] sm:$0xff]  ;;  %v1542_v16 = vld [vmem:[#allocation2 + $0x330] sm:$0xff]  ;;  %v1557_v17 = vld [vmem:[#allocation2 + $0x3a8] sm:$0xff] }
 0x15e   : > { %2069 = vmatprep.subr.mxu0 %v1526_v18  ;;  %v1541_v18 = vld [vmem:[#allocation2 + $0x328] sm:$0xff]  ;;  %v1556_v20 = vld [vmem:[#allocation2 + $0x3a0] sm:$0xff]  ;;  %v1539_v21 = vld [vmem:[#allocation2 + $0x318] sm:$0xff] }
 0x15f   : > { %2070 = vmatpush3.msra.mxu0 %v1510_v2  ;;  %v1433_v32 = vmax.f32 %v960_v24, 0.0  ;;  %v1555_v2 = vld [vmem:[#allocation2 + $0x398] sm:$0xff]  ;;  %v1538_v24 = vld [vmem:[#allocation2 + $0x310] sm:$0xff] }
 0x160   : > { %2071 = vmatprep.subr.mxu0 %v1525_v22  ;;  %v1554_v22 = vld [vmem:[#allocation2 + $0x390] sm:$0xff] }
 0x161   : > { %v1028_v34 = vpop.f32.mrf.mxu0  ;;  %2072 = vmatpush3.msra.mxu0 %v1509_v25  ;;  %1644 = vmatprep.mubr.f32.mxu0 %v1433_v32  ;;  %v1537_v25 = vld [vmem:[#allocation2 + $0x308] sm:$0xff]  ;;  %v786_v32 = vsub.s32 4, %v3800_v7 }
 0x162   : > { %v1029_v36 = vadd.f32 %v1028_v34, %v779_v27  ;;  %2073 = vmatprep.subr.mxu0 %v1524_v31  ;;  %1645 = vmatmul.mubr.f32.gmra.mxu0 %v1432_v28  ;;  %v1552_v28 = vld [vmem:[#allocation2 + $0x380] sm:$0xff] }
 0x163   : > { %v1105_v57 = vpop.f32.mrf.mxu1  ;;  %v1030_v37 = vpop.f32.mrf.mxu0  ;;  %2074 = vmatpush3.msra.mxu0 %v1508_v35  ;;  %v1536_v31 = vld [vmem:[#allocation2 + $0x300] sm:$0xff]  ;;  %v787_v34 = vrot.slane %v3836_v19, %v786_v32 }
 0x164   : > { %v1031_v39 = vadd.f32 %v1030_v37, %v783_v33  ;;  %v1106_v40 = vadd.f32 %v1105_v57, %v1029_v36  ;;  %2075 = vmatprep.subr.mxu0 %v1523_v54 }
 0x165   : > { %v1107_v41 = vpop.f32.mrf.mxu1  ;;  %2076 = vmatpush3.msra.mxu0 %v1507_v38 }
 0x166   : > { %v1108_v63 = vadd.f32 %v1107_v41, %v1031_v39  ;;  %2077 = vmatprep.subr.mxu0 %v1522_v60  ;;  %v1426_v26 = vmax.f32 %v1106_v40, 0.0 }
 0x167   : > { %v1034_v43 = vpop.f32.mrf.mxu0  ;;  %2078 = vmatpush3.msra.mxu0 %v1506_v42 }
 0x168   : > { %v1427_v5 = vmax.f32 %v1108_v63, 0.0  ;;  %v1035_v45 = vadd.f32 %v1034_v43, %v779_v27  ;;  %2079 = vmatprep.subr.mxu0 %v1521_v3  ;;  %v1553_v27 = vld [vmem:[#allocation2 + $0x388] sm:$0xff] }
 0x169   : > { %v1036_v23 = vpop.f32.mrf.mxu0  ;;  %2080 = vmatpush3.msra.mxu0 %v1505_v44 }
 0x16a   : > { %v1037_v47 = vadd.f32 %v1036_v23, %v783_v33  ;;  %1714 = vmatprep.mubr.f32.mxu1 %v1427_v5  ;;  %v1111_v49 = vpop.f32.mrf.mxu1  ;;  %2081 = vmatprep.subr.mxu0 %v1520_v46  ;;  %v790_v33 = vsub.s32 5, %v3800_v7 }
 0x16b   : > { %1715 = vmatmul.mubr.f32.vlgmr.msra.gmra.mxu1 %v1426_v26  ;;  %v1112_v51 = vadd.f32 %v1111_v49, %v1035_v45  ;;  %2082 = vmatpush3.msra.mxu0 %v1504_v30 }
 0x16c   : > { %2090 = vmatpush3.msra.mxu1 %v1551_v29  ;;  %v1113_v53 = vpop.f32.mrf.mxu1  ;;  %v791_v35 = vrot.slane %v3836_v19, %v790_v33  ;;  %v794_v29 = vsub.s32 6, %v3800_v7 }
 0x16d   : > { %2091 = vmatprep.subr.mxu1 %v1566_v48  ;;  %v1114_v56 = vadd.f32 %v1113_v53, %v1037_v47  ;;  %v1434_v59 = vmax.f32 %v1112_v51, 0.0  ;;  %v798_v47 = vsub.s32 7, %v3800_v7 }
 0x16e   : > { %2092 = vmatpush3.msra.mxu1 %v1550_v50  ;;  %v795_v48 = vrot.slane %v3836_v19, %v794_v29 }
 0x16f   : > { %2093 = vmatprep.subr.mxu1 %v1565_v52  ;;  %v1435_v62 = vmax.f32 %v1114_v56, 0.0  ;;  %v799_v49 = vrot.slane %v3836_v19, %v798_v47 }
 0x170   : > { %2094 = vmatpush3.msra.mxu1 %v1549_v55 }
 0x171   : > { %2095 = vmatprep.subr.mxu1 %v1564_v58  ;;  %1719 = vmatprep.mubr.f32.mxu1 %v1435_v62 }
 0x172   : > { %2096 = vmatpush3.msra.mxu1 %v1548_v61 }
 0x173   : > { %1720 = vmatmul.mubr.f32.gmra.mxu1 %v1434_v59  ;;  %2097 = vmatprep.subr.mxu1 %v1563_v0 }
 0x174   : > { %2098 = vmatpush3.msra.mxu1 %v1547_v4 }
 0x175   : > { %2099 = vmatprep.subr.mxu1 %v1562_v6 }
 0x176   : > { %2100 = vmatpush3.msra.mxu1 %v1546_v8 }
 0x177   : > { %2101 = vmatprep.subr.mxu1 %v1561_v9 }
 0x178   : > { %2102 = vmatpush3.msra.mxu1 %v1545_v10 }
 0x179   : > { %2103 = vmatprep.subr.mxu1 %v1560_v11 }
 0x17a   : > { %2104 = vmatpush3.msra.mxu1 %v1544_v12 }
 0x17b   : > { %2105 = vmatprep.subr.mxu1 %v1559_v13 }
 0x17c   : > { %2106 = vmatpush3.msra.mxu1 %v1543_v14 }
 0x17d   : > { %2107 = vmatprep.subr.mxu1 %v1558_v15 }
 0x17e   : > { %2108 = vmatpush3.msra.mxu1 %v1542_v16 }
 0x17f   : > { %2109 = vmatprep.subr.mxu1 %v1557_v17 }
 0x180   : > { %2110 = vmatpush3.msra.mxu1 %v1541_v18 }
 0x181   : > { %2111 = vmatprep.subr.mxu1 %v1556_v20 }
 0x182   : > { %2112 = vmatpush3.msra.mxu1 %v1540_v1 }
 0x183   : > { %2113 = vmatprep.subr.mxu1 %v1555_v2 }
 0x184   : > { %2114 = vmatpush3.msra.mxu1 %v1539_v21 }
 0x185   : > { %2115 = vmatprep.subr.mxu1 %v1554_v22  ;;  %v1969_v22 = vld [vmem:[%s3937_s4] ss:$0 sm:$0xff] }
 0x186   : > { %2116 = vmatpush3.msra.mxu1 %v1538_v24 }
 0x187   : > { %2117 = vmatprep.subr.mxu1 %v1553_v27 }
 0x188   : > { %2118 = vmatpush3.msra.mxu1 %v1537_v25 }
 0x189   : > { %2119 = vmatprep.subr.mxu1 %v1552_v28 }
 0x18a   : > { %2120 = vmatpush3.msra.mxu1 %v1536_v31 }
 0x1a5   : > { %v1182_v36 = vpop.f32.mrf.mxu0 }
 0x1a6   : > { %v1183_v54 = vadd.f32 %v1182_v36, %v787_v34 }
 0x1a7   : > { %v1259_v57 = vpop.f32.mrf.mxu1  ;;  %v1184_v37 = vpop.f32.mrf.mxu0 }
 0x1a8   : > { %v1185_v38 = vadd.f32 %v1184_v37, %v791_v35  ;;  %v1260_v39 = vadd.f32 %v1259_v57, %v1183_v54 }
 0x1a9   : > { %v1261_v60 = vpop.f32.mrf.mxu1 }
 0x1aa   : > { %v1262_v40 = vadd.f32 %v1261_v60, %v1185_v38  ;;  %v1428_v3 = vmax.f32 %v1260_v39, 0.0 }
 0x1ab   : > { %v1188_v41 = vpop.f32.mrf.mxu0 }
 0x1ac   : > { %v1429_v42 = vmax.f32 %v1262_v40, 0.0  ;;  %v1189_v63 = vadd.f32 %v1188_v41, %v787_v34 }
 0x1ad   : > { %v1190_v43 = vpop.f32.mrf.mxu0 }
 0x1ae   : > { %v1191_v44 = vadd.f32 %v1190_v43, %v791_v35  ;;  %1789 = vmatprep.mubr.f32.mxu0 %v1429_v42  ;;  %v1265_v5 = vpop.f32.mrf.mxu1 }
 0x1af   : > { %1790 = vmatmul.mubr.f32.vlgmr.msra.gmra.mxu0 %v1428_v3  ;;  %v1266_v45 = vadd.f32 %v1265_v5, %v1189_v63 }
 0x1b0   : > { %v1267_v46 = vpop.f32.mrf.mxu1 }
 0x1b1   : > { %v1268_v26 = vadd.f32 %v1267_v46, %v1191_v44  ;;  %v1436_v23 = vmax.f32 %v1266_v45, 0.0 }
 0x1b3   : > { %v1437_v30 = vmax.f32 %v1268_v26, 0.0 }
 0x1b5   : > { %1794 = vmatprep.mubr.f32.mxu0 %v1437_v30 }
 0x1b6   : > { %1795 = vmatmul.mubr.f32.gmra.mxu0 %v1436_v23 }
 0x1e9   : > { %v1336_v50 = vpop.f32.mrf.mxu0 }
 0x1ea   : > { %v1413_v51 = vpop.f32.mrf.mxu1  ;;  %v1337_v52 = vadd.f32 %v1336_v50, %v795_v48 }
 0x1eb   : > { %v1338_v53 = vpop.f32.mrf.mxu0 }
 0x1ec   : > { %v1415_v55 = vpop.f32.mrf.mxu1  ;;  %v1339_v56 = vadd.f32 %v1338_v53, %v799_v49  ;;  %v1414_v58 = vadd.f32 %v1413_v51, %v1337_v52 }
 0x1ee   : > { %v1416_v59 = vadd.f32 %v1415_v55, %v1339_v56  ;;  %v1342_v61 = vpop.f32.mrf.mxu0  ;;  %v1419_v62 = vpop.f32.mrf.mxu1  ;;  %v1430_v8 = vmax.f32 %v1414_v58, 0.0 }
 0x1ef   : > { %v1343_v0 = vadd.f32 %v1342_v61, %v795_v48 }
 0x1f0   : > { %v1431_v4 = vmax.f32 %v1416_v59, 0.0  ;;  %v1344_v6 = vpop.f32.mrf.mxu0  ;;  %v1421_v10 = vpop.f32.mrf.mxu1 }
 0x1f1   : > { %v1345_v9 = vadd.f32 %v1344_v6, %v799_v49  ;;  %v1420_v7 = vadd.f32 %v1419_v62, %v1343_v0 }
 0x1f2   : > { %1864 = vmatprep.mubr.f32.mxu1 %v1431_v4 }
 0x1f3   : > { %v1422_v11 = vadd.f32 %v1421_v10, %v1345_v9  ;;  %1865 = vmatmul.mubr.f32.vlgmr.msra.gmra.mxu1 %v1430_v8  ;;  %v1438_v12 = vmax.f32 %v1420_v7, 0.0 }
 0x1f5   : > { %v1439_v19 = vmax.f32 %v1422_v11, 0.0 }
 0x1f7   : > { %1869 = vmatprep.mubr.f32.mxu1 %v1439_v19 }
 0x1f8   : > { %1870 = vmatmul.mubr.f32.gmra.mxu1 %v1438_v12 }
 0x20b   : > { %v2007_v13 = vpop.f32.mrf.mxu0 }
 0x20d   : > { %v2008_v14 = vpop.f32.mrf.mxu0 }
 0x20e   : > { %v2009_v21 = vadd.f32 %v2008_v14, %v2007_v13 }
 0x210   : > { %v1642_v28 = vadd.f32 %v2009_v21, %v1969_v22 }
 0x222   : > { %v2010_v15 = vpop.f32.mrf.mxu0 }
 0x224   : > { %v2011_v17 = vpop.f32.mrf.mxu0 }
 0x225   : > { %v2012_v32 = vadd.f32 %v2011_v17, %v2010_v15 }
 0x227   : > { %v1647_v38 = vadd.f32 %v2012_v32, %v1969_v22 }
 0x22b   : > { %v2045_v16 = vpop.f32.mrf.mxu1 }
 0x22d   : > { %v2046_v20 = vpop.f32.mrf.mxu1 }
 0x22e   : > { %v2047_v24 = vadd.f32 %v2046_v20, %v2045_v16 }
 0x230   : > { %v1717_v34 = vadd.f32 %v2047_v24, %v1642_v28 }
 0x233   : > { %v2048_v2 = vpop.f32.mrf.mxu1 }
 0x235   : > { %v2049_v25 = vpop.f32.mrf.mxu1 }
 0x236   : > { %v2050_v36 = vadd.f32 %v2049_v25, %v2048_v2 }
 0x238   : > { %v1722_v41 = vadd.f32 %v2050_v36, %v1647_v38 }
 0x26f   : > { %v2083_v18 = vpop.f32.mrf.mxu0 }
 0x271   : > { %v2084_v1 = vpop.f32.mrf.mxu0 }
 0x272   : > { %v2085_v31 = vadd.f32 %v2084_v1, %v2083_v18 }
 0x274   : > { %v1792_v57 = vadd.f32 %v2085_v31, %v1717_v34 }
 0x276   : > { %v2086_v27 = vpop.f32.mrf.mxu0 }
 0x278   : > { %v2087_v35 = vpop.f32.mrf.mxu0 }
 0x279   : > { %v2088_v39 = vadd.f32 %v2087_v35, %v2086_v27 }
 0x27b   : > { %v1797_v3 = vadd.f32 %v2088_v39, %v1722_v41 }
 0x2b3   : > { %v2121_v33 = vpop.f32.mrf.mxu1 }
 0x2b5   : > { %v2122_v54 = vpop.f32.mrf.mxu1 }
 0x2b6   : > { %v2123_v37 = vadd.f32 %v2122_v54, %v2121_v33 }
 0x2b8   : > { %v1867_v60 = vadd.f32 %v2123_v37, %v1792_v57  ;;  %v2124_v40 = vpop.f32.mrf.mxu1 }
 0x2ba   : > { %v1970_v42 = vmul.f32 -1.442695, %v1867_v60  ;;  %v2125_v63 = vpop.f32.mrf.mxu1 }
 0x2bb   : > { %v2126_v43 = vadd.f32 %v2125_v63, %v2124_v40 }
 0x2bc   : > { %2148 = vpow2.f32 %v1970_v42 }
 0x2bd   : > { %v1872_v44 = vadd.f32 %v2126_v43, %v1797_v3 }
 0x2bf   : > { %v1971_v5 = vmul.f32 -1.442695, %v1872_v44 }
 0x2c1   : > { %2150 = vpow2.f32 %v1971_v5 }
 0x2c9   : > { %v2149_v45 = vpop.eup %2148 }
 0x2ca   : > { %v1881_v46 = vadd.f32 1.0, %v2149_v45 }
 0x2cc   : > { %2152 = vrcp.f32 %v1881_v46 }
 0x2ce   : > { %v2151_v26 = vpop.eup %2150 }
 0x2cf   : > { %v1882_v23 = vadd.f32 1.0, %v2151_v26 }
 0x2d1   : > { %2154 = vrcp.f32 %v1882_v23 }
 0x2d9   : > { %v2153_v30 = vpop.eup %2152 }
 0x2da   : > { %1887 = vst [vmem:[%s244_s19] sm:$0xff] %v2153_v30 }
 0x2de   : > { %v2155_v29 = vpop.eup %2154 }
 0x2df   : > { %1888 = vst [vmem:[%s244_s19 + $0x8] sm:$0xff] %v2155_v29 }
 0x2e0 PF: > { %s16_s18 = sadd.s32 1, %s2200_s18  }
 0x2e1   : > { %p13_p1 = scmp.ge.s32.totalorder %s16_s18, 4  }
 0x2e3   :  { %15 = sbr.rel (!%p13_p1) target bundleno = 1 (0x1), region = 75 }
 0x2e8   :  { %1911 = vsyncpa [#allocation3], 1 }
 0x2e9   :  { %1913 = vsyncpa [#allocation3 + $0x1], 1 }

</bundles_post_ra>
